<compile_context>
chip_gen: v7x
topology: tpu7x:2x2x1
jax: 0.10.0
libtpu: 0.0.40
codegen_flags: <defaults>
</compile_context>

<pallas_src>
import functools

import jax
import jax.numpy as jnp
from jax import lax
from jax.experimental import pallas as pl
from jax.experimental.pallas import tpu as pltpu


def _supcon_kernel(x_ref, w_ref, b_ref, out_ref, *,
                   cl_temperature, n_pos, n_neg, n_rows, ta):
    """One grid step: `ta` sub-batches of `n_rows` rows each.

    x_ref:   [ta * n_rows, D]   (rows of `ta` consecutive sub-batches)
    w_ref:   [D, E]             adapter weight (VMEM-resident across the grid)
    b_ref:   [1, E]             adapter bias
    out_ref: [ta, 4]            per-anchor [loss, pos_numerator, neg_numerator, denominator]
    """
    # Adapter projection for all rows of this step in one MXU pass (bf16/f32 in,
    # f32 accumulate), bias added on the VPU.
    proj = jnp.dot(x_ref[...], w_ref[...],
                   preferred_element_type=jnp.float32)            # [ta*N, E]
    proj = proj + b_ref[...].astype(jnp.float32)

    e_dim = proj.shape[-1]
    proj3 = proj.reshape(ta, n_rows, e_dim)                       # [ta, N, E]
    anchors = proj3[:, 0:1, :]                                    # [ta, 1, E]

    # anchor . row_i via broadcast-mul + lane reduce (VPU/XLU; no transposed MXU pass).
    dots = jnp.sum(proj3 * anchors, axis=2)                       # [ta, N]
    sa = jnp.sum(anchors * anchors, axis=2)                       # [ta, 1]
    sr = jnp.sum(proj3 * proj3, axis=2)                           # [ta, N]

    eps = jnp.float32(1e-8)                                       # torch CosineSimilarity eps
    inv_temp = jnp.float32(1.0 / cl_temperature)
    # cos/temperature = dots * rsqrt(max(||a||^2 * ||r||^2, eps^2)) / temp   (EUP rsqrt)
    scale = lax.rsqrt(jnp.maximum(sa * sr, eps * eps))            # [ta, N]
    sims = dots * scale * inv_temp                                # [ta, N]

    row = lax.broadcasted_iota(jnp.int32, sims.shape, 1)
    pos_mask = (row >= 1) & (row <= n_pos)                        # rows 1..n_pos
    neg_mask = row >= (n_rows - n_neg)                            # last n_neg rows

    neg_inf = jnp.float32(-jnp.inf)
    max_pos = jnp.max(jnp.where(pos_mask, sims, neg_inf),
                      axis=1, keepdims=True)                      # [ta, 1] (matches torch)

    # Single EUP exp, reused for both masks.
    e = jnp.exp(sims - max_pos)                                   # [ta, N]
    exp_pos = jnp.where(pos_mask, e, 0.0)
    exp_neg = jnp.where(neg_mask, e, 0.0)
    sum_exp_pos = jnp.sum(exp_pos, axis=1, keepdims=True)         # [ta, 1]
    sum_exp_neg = jnp.sum(exp_neg, axis=1, keepdims=True)         # [ta, 1]

    denominator = sum_exp_pos + sum_exp_neg
    log_denom = jnp.log(denominator)

    # log(exp_pos) == (sims - max_pos) on positive rows; loss = mean(-log_prob)
    loss_terms = jnp.where(pos_mask, -(sims - max_pos - log_denom), 0.0)
    loss = jnp.sum(loss_terms, axis=1, keepdims=True) / jnp.float32(n_pos)

    out_ref[:, 0:1] = loss                                        # loss
    out_ref[:, 1:2] = sum_exp_pos / jnp.float32(n_pos)            # pos_numerator
    out_ref[:, 2:3] = sum_exp_neg / jnp.float32(n_neg)            # neg_numerator
    out_ref[:, 3:4] = denominator                                 # denominator


def _pick_anchors_per_step(num_anchors, n_rows, target_rows=256):
    """Largest divisor of num_anchors giving <= target_rows rows/step while
    keeping the (8, 128) sublane alignment of the x and output blocks."""
    cap = max(1, target_rows // max(n_rows, 1))
    best = None
    for d in range(1, num_anchors + 1):
        if num_anchors % d:
            continue
        aligned = (d == num_anchors) or (d % 8 == 0 and (d * n_rows) % 8 == 0)
        if aligned and d <= cap:
            best = d
    return best if best is not None else num_anchors


def supcon_loss_batched(contrastive_batches, W, b, *, cl_temperature,
                        n_positives, n_negatives, anchors_per_step=None):
    """contrastive_batches: [A, N, D] (A independent sub-batches, anchor = row 0).

    Returns [A, 4] float32: per sub-batch [loss, pos_numerator, neg_numerator, denominator].
    Inputs may be bf16 or f32; cosine/softmax math is always f32.
    """
    A, N, D = contrastive_batches.shape
    E = W.shape[-1]

    ta = anchors_per_step if anchors_per_step is not None else _pick_anchors_per_step(A, N)
    assert A % ta == 0, (A, ta)

    x2 = contrastive_batches.reshape(A * N, D)
    b2 = b.reshape(1, E)

    kernel = functools.partial(
        _supcon_kernel,
        cl_temperature=float(cl_temperature),
        n_pos=int(n_positives), n_neg=int(n_negatives),
        n_rows=int(N), ta=int(ta))

    out = pl.pallas_call(
        kernel,
        out_shape=jax.ShapeDtypeStruct((A, 4), jnp.float32),
        grid=(A // ta,),
        in_specs=[
            pl.BlockSpec((ta * N, D), lambda g: (g, 0)),   # rows of this anchor group
            pl.BlockSpec((D, E), lambda g: (0, 0)),        # W: resident across grid
            pl.BlockSpec((1, E), lambda g: (0, 0)),        # b: resident across grid
        ],
        out_specs=pl.BlockSpec((ta, 4), lambda g: (g, 0)),
        compiler_params=pltpu.CompilerParams(
            dimension_semantics=("parallel",)),
    )(x2, W, b2)
    return out


def supervised_contrastive_loss(contrastive_batch, W, b, *, cl_temperature,
                                n_positives, n_negatives):
    """Single sub-batch [N, D] — mirrors the torch module's forward signature.

    Returns (loss, pos_numerator, neg_numerator, denominator[(1,)])."""
    out = supcon_loss_batched(contrastive_batch[None], W, b,
                              cl_temperature=cl_temperature,
                              n_positives=n_positives, n_negatives=n_negatives,
                              anchors_per_step=1)
    return out[0, 0], out[0, 1], out[0, 2], out[0, 3:4]


def _reference(contrastive_batch, W, b, *, cl_temperature, n_positives, n_negatives):
    """Plain-JAX transcription of the PyTorch forward, for verification."""
    N = contrastive_batch.shape[0]
    neg_indices = jnp.asarray([0] + list(range(N))[-n_negatives:], dtype=jnp.int32)
    anchor_negatives = contrastive_batch[neg_indices]
    anchor_positives = contrastive_batch[:1 + n_positives]

    def compute_sim(feats):
        out = feats @ W + b
        a = out[0:1]
        rest = out[1:]
        eps = 1e-8
        cos = jnp.sum(a * rest, axis=1) / jnp.maximum(
            jnp.linalg.norm(a, axis=1) * jnp.linalg.norm(rest, axis=1), eps)
        return cos / cl_temperature

    pos = compute_sim(anchor_positives)
    max_pos = jnp.max(pos, axis=0, keepdims=True)
    exp_pos = jnp.exp(pos - max_pos)
    neg = compute_sim(anchor_negatives)
    exp_neg = jnp.exp(neg - max_pos)
    sum_exp_neg = jnp.sum(exp_neg, axis=0, keepdims=True)
    denominator = sum_exp_neg + jnp.sum(exp_pos, axis=0, keepdims=True)
    log_probs = jnp.log(exp_pos) - jnp.log(denominator)
    return (-log_probs).mean(), exp_pos.mean(), exp_neg.mean(), denominator


if __name__ == "__main__":
    key = jax.random.PRNGKey(0)
    k_batch, k_w, k_b = jax.random.split(key, 3)

    # A sub-batches of 8 feature vectors each, feature dim 32, adapter dim 32.
    A, N, D, E = 64, 8, 32, 32
    n_positives, n_negatives = 3, 4
    cl_temperature = 0.1

    batches = jax.random.normal(k_batch, (A, N, D), dtype=jnp.float32)
    W = 0.1 * jax.random.normal(k_w, (D, E), dtype=jnp.float32)
    b = 0.01 * jax.random.normal(k_b, (E,), dtype=jnp.float32)

    # Batched kernel: anchors_per_step auto-picks 32 -> 256-row matmul/step, grid=(2,).
    out = supcon_loss_batched(batches, W, b,
                              cl_temperature=cl_temperature,
                              n_positives=n_positives, n_negatives=n_negatives)
    out = jax.block_until_ready(out)

    ref_loss, ref_pos, ref_neg, ref_den = jax.vmap(
        lambda xb: _reference(xb, W, b, cl_temperature=cl_temperature,
                              n_positives=n_positives, n_negatives=n_negatives))(batches)
    assert jnp.allclose(out[:, 0], ref_loss, rtol=1e-4, atol=1e-4), (out[:, 0], ref_loss)
    assert jnp.allclose(out[:, 1], ref_pos, rtol=1e-4, atol=1e-4), (out[:, 1], ref_pos)
    assert jnp.allclose(out[:, 2], ref_neg, rtol=1e-4, atol=1e-4), (out[:, 2], ref_neg)
    assert jnp.allclose(out[:, 3:4], ref_den, rtol=1e-4, atol=1e-4), (out[:, 3:4], ref_den)

    # Module-style single sub-batch call (torch forward signature).
    single = supervised_contrastive_loss(batches[0], W, b,
                                         cl_temperature=cl_temperature,
                                         n_positives=n_positives,
                                         n_negatives=n_negatives)
    single = jax.block_until_ready(single)
    refs0 = _reference(batches[0], W, b, cl_temperature=cl_temperature,
                       n_positives=n_positives, n_negatives=n_negatives)
    for got, want in zip(single, refs0):
        assert jnp.allclose(got, want, rtol=1e-4, atol=1e-4), (got, want)

    print("KERNEL_OK")
</pallas_src>

<mosaic_0001>
module attributes {stable_mosaic.version = 11 : i64} {
  func.func @_supcon_kernel(%arg0: i32, %arg1: memref<256x32xf32, #tpu.memory_space<vmem>>, %arg2: memref<32x32xf32, #tpu.memory_space<vmem>>, %arg3: memref<1x32xf32, #tpu.memory_space<vmem>>, %arg4: memref<32x4xf32, #tpu.memory_space<vmem>>) attributes {dimension_semantics = [#tpu.dimension_semantics<parallel>], iteration_bounds = array<i64: 2>, scalar_prefetch = 0 : i64, scratch_operands = 0 : i64, tpu.core_type = #tpu.core_type<tc>, window_params = [{transform_indices = @transform_0, window_bounds = array<i64: 256, 32>}, {pipeline_mode = #tpu.pipeline_mode<synchronous>, transform_indices = @transform_1, window_bounds = array<i64: 32, 32>}, {pipeline_mode = #tpu.pipeline_mode<synchronous>, transform_indices = @transform_2, window_bounds = array<i64: 1, 32>}, {transform_indices = @transform_3, window_bounds = array<i64: 32, 4>}]} {
    %c0 = arith.constant 0 : index
    %c0_0 = arith.constant 0 : index
    %0 = vector.load %arg1[%c0, %c0_0] : memref<256x32xf32, #tpu.memory_space<vmem>>, vector<256x32xf32>
    %c0_1 = arith.constant 0 : index
    %c0_2 = arith.constant 0 : index
    %1 = vector.load %arg2[%c0_1, %c0_2] : memref<32x32xf32, #tpu.memory_space<vmem>>, vector<32x32xf32>
    %cst = arith.constant dense<0.000000e+00> : vector<256x32xf32>
    %2 = tpu.matmul %0, %1, %cst {dimension_numbers = #tpu.dot_dimension_numbers<[1], [0], [0], [1], [0, 0, 1, 1], [], []>} : vector<256x32xf32>, vector<32x32xf32>, vector<256x32xf32> -> vector<256x32xf32>
    %c0_3 = arith.constant 0 : index
    %c0_4 = arith.constant 0 : index
    %3 = vector.load %arg3[%c0_3, %c0_4] : memref<1x32xf32, #tpu.memory_space<vmem>>, vector<1x32xf32>
    %4 = vector.broadcast %3 : vector<1x32xf32> to vector<256x32xf32>
    %5 = arith.addf %2, %4 : vector<256x32xf32>
    %6 = vector.shape_cast %5 : vector<256x32xf32> to vector<32x8x32xf32>
    %7 = vector.extract_strided_slice %6 {offsets = [0, 0, 0], sizes = [32, 1, 32], strides = [1, 1, 1]} : vector<32x8x32xf32> to vector<32x1x32xf32>
    %8 = vector.broadcast %7 : vector<32x1x32xf32> to vector<32x8x32xf32>
    %9 = arith.mulf %6, %8 : vector<32x8x32xf32>
    %cst_5 = arith.constant dense<0.000000e+00> : vector<32x8xf32>
    %10 = vector.multi_reduction <add>, %9, %cst_5 [2] : vector<32x8x32xf32> to vector<32x8xf32>
    %11 = arith.mulf %7, %7 : vector<32x1x32xf32>
    %cst_6 = arith.constant dense<0.000000e+00> : vector<32x1xf32>
    %12 = vector.multi_reduction <add>, %11, %cst_6 [2] : vector<32x1x32xf32> to vector<32x1xf32>
    %13 = arith.mulf %6, %6 : vector<32x8x32xf32>
    %cst_7 = arith.constant dense<0.000000e+00> : vector<32x8xf32>
    %14 = vector.multi_reduction <add>, %13, %cst_7 [2] : vector<32x8x32xf32> to vector<32x8xf32>
    %15 = vector.broadcast %12 : vector<32x1xf32> to vector<32x8xf32>
    %16 = arith.mulf %15, %14 : vector<32x8xf32>
    %cst_8 = arith.constant 9.99999993E-9 : f32
    %cst_9 = arith.constant 9.99999993E-9 : f32
    %17 = arith.mulf %cst_8, %cst_9 : f32
    %18 = vector.broadcast %17 : f32 to vector<32x8xf32>
    %19 = arith.maximumf %16, %18 : vector<32x8xf32>
    %20 = math.rsqrt %19 : vector<32x8xf32>
    %21 = arith.mulf %10, %20 : vector<32x8xf32>
    %cst_10 = arith.constant 1.000000e+01 : f32
    %22 = vector.broadcast %cst_10 : f32 to vector<32x8xf32>
    %23 = arith.mulf %21, %22 : vector<32x8xf32>
    %24 = tpu.iota {dimensions = array<i32: 1>} : vector<32x8xi32>
    %c1_i32 = arith.constant 1 : i32
    %25 = vector.broadcast %c1_i32 : i32 to vector<32x8xi32>
    %26 = arith.cmpi sge, %24, %25 : vector<32x8xi32>
    %c3_i32 = arith.constant 3 : i32
    %27 = vector.broadcast %c3_i32 : i32 to vector<32x8xi32>
    %28 = arith.cmpi sle, %24, %27 : vector<32x8xi32>
    %29 = arith.andi %26, %28 : vector<32x8xi1>
    %c4_i32 = arith.constant 4 : i32
    %30 = vector.broadcast %c4_i32 : i32 to vector<32x8xi32>
    %31 = arith.cmpi sge, %24, %30 : vector<32x8xi32>
    %cst_11 = arith.constant 0xFF800000 : f32
    %32 = vector.broadcast %cst_11 : f32 to vector<32x8xf32>
    %33 = arith.select %29, %23, %32 : vector<32x8xi1>, vector<32x8xf32>
    %cst_12 = arith.constant dense<0xFF800000> : vector<32xf32>
    %34 = vector.multi_reduction <maximumf>, %33, %cst_12 [1] : vector<32x8xf32> to vector<32xf32>
    %35 = vector.shape_cast %34 : vector<32xf32> to vector<32x1xf32>
    %36 = vector.broadcast %35 : vector<32x1xf32> to vector<32x8xf32>
    %37 = arith.subf %23, %36 : vector<32x8xf32>
    %38 = math.exp %37 : vector<32x8xf32>
    %cst_13 = arith.constant 0.000000e+00 : f32
    %39 = vector.broadcast %cst_13 : f32 to vector<32x8xf32>
    %40 = arith.select %29, %38, %39 : vector<32x8xi1>, vector<32x8xf32>
    %cst_14 = arith.constant 0.000000e+00 : f32
    %41 = vector.broadcast %cst_14 : f32 to vector<32x8xf32>
    %42 = arith.select %31, %38, %41 : vector<32x8xi1>, vector<32x8xf32>
    %cst_15 = arith.constant dense<0.000000e+00> : vector<32xf32>
    %43 = vector.multi_reduction <add>, %40, %cst_15 [1] : vector<32x8xf32> to vector<32xf32>
    %44 = vector.shape_cast %43 : vector<32xf32> to vector<32x1xf32>
    %cst_16 = arith.constant dense<0.000000e+00> : vector<32xf32>
    %45 = vector.multi_reduction <add>, %42, %cst_16 [1] : vector<32x8xf32> to vector<32xf32>
    %46 = vector.shape_cast %45 : vector<32xf32> to vector<32x1xf32>
    %47 = arith.addf %44, %46 : vector<32x1xf32>
    %48 = math.log %47 : vector<32x1xf32>
    %49 = vector.broadcast %35 : vector<32x1xf32> to vector<32x8xf32>
    %50 = arith.subf %23, %49 : vector<32x8xf32>
    %51 = vector.broadcast %48 : vector<32x1xf32> to vector<32x8xf32>
    %52 = arith.subf %50, %51 : vector<32x8xf32>
    %cst_17 = arith.constant 0.000000e+00 : f32
    %53 = vector.broadcast %cst_17 : f32 to vector<32x8xf32>
    %54 = arith.subf %53, %52 : vector<32x8xf32>
    %cst_18 = arith.constant 0.000000e+00 : f32
    %55 = vector.broadcast %cst_18 : f32 to vector<32x8xf32>
    %56 = arith.select %29, %54, %55 : vector<32x8xi1>, vector<32x8xf32>
    %cst_19 = arith.constant dense<0.000000e+00> : vector<32xf32>
    %57 = vector.multi_reduction <add>, %56, %cst_19 [1] : vector<32x8xf32> to vector<32xf32>
    %58 = vector.shape_cast %57 : vector<32xf32> to vector<32x1xf32>
    %cst_20 = arith.constant 3.000000e+00 : f32
    %59 = vector.broadcast %cst_20 : f32 to vector<32x1xf32>
    %60 = arith.divf %58, %59 : vector<32x1xf32>
    %c0_21 = arith.constant 0 : index
    %c0_22 = arith.constant 0 : index
    %61 = vector.load %arg4[%c0_21, %c0_22] : memref<32x4xf32, #tpu.memory_space<vmem>>, vector<32x1xf32>
    tpu.vector_store %arg4[%c0_21, %c0_22], %60 {strides = array<i32>} : memref<32x4xf32, #tpu.memory_space<vmem>>, vector<32x1xf32>,
    %cst_23 = arith.constant 3.000000e+00 : f32
    %62 = vector.broadcast %cst_23 : f32 to vector<32x1xf32>
    %63 = arith.divf %44, %62 : vector<32x1xf32>
    %c0_24 = arith.constant 0 : index
    %c1 = arith.constant 1 : index
    %64 = vector.load %arg4[%c0_24, %c1] : memref<32x4xf32, #tpu.memory_space<vmem>>, vector<32x1xf32>
    tpu.vector_store %arg4[%c0_24, %c1], %63 {strides = array<i32>} : memref<32x4xf32, #tpu.memory_space<vmem>>, vector<32x1xf32>,
    %cst_25 = arith.constant 4.000000e+00 : f32
    %65 = vector.broadcast %cst_25 : f32 to vector<32x1xf32>
    %66 = arith.divf %46, %65 : vector<32x1xf32>
    %c0_26 = arith.constant 0 : index
    %c2 = arith.constant 2 : index
    %67 = vector.load %arg4[%c0_26, %c2] : memref<32x4xf32, #tpu.memory_space<vmem>>, vector<32x1xf32>
    tpu.vector_store %arg4[%c0_26, %c2], %66 {strides = array<i32>} : memref<32x4xf32, #tpu.memory_space<vmem>>, vector<32x1xf32>,
    %c0_27 = arith.constant 0 : index
    %c3 = arith.constant 3 : index
    %68 = vector.load %arg4[%c0_27, %c3] : memref<32x4xf32, #tpu.memory_space<vmem>>, vector<32x1xf32>
    tpu.vector_store %arg4[%c0_27, %c3], %47 {strides = array<i32>} : memref<32x4xf32, #tpu.memory_space<vmem>>, vector<32x1xf32>,
    return
  }
  func.func @transform_0(%arg0: i32) -> (i32, i32) {
    %c0_i32 = arith.constant 0 : i32
    %c0_i32_0 = arith.constant 0 : i32
    return %arg0, %c0_i32 : i32, i32
  }
  func.func @transform_1(%arg0: i32) -> (i32, i32) {
    %c0_i32 = arith.constant 0 : i32
    %c0_i32_0 = arith.constant 0 : i32
    %c0_i32_1 = arith.constant 0 : i32
    return %c0_i32, %c0_i32_0 : i32, i32
  }
  func.func @transform_2(%arg0: i32) -> (i32, i32) {
    %c0_i32 = arith.constant 0 : i32
    %c0_i32_0 = arith.constant 0 : i32
    %c0_i32_1 = arith.constant 0 : i32
    return %c0_i32, %c0_i32_0 : i32, i32
  }
  func.func @transform_3(%arg0: i32) -> (i32, i32) {
    %c0_i32 = arith.constant 0 : i32
    %c0_i32_0 = arith.constant 0 : i32
    return %arg0, %c0_i32 : i32, i32
  }
}

</mosaic_0001>

<bundles_post_ra>
// kernel: tpu_custom_call.1
= control target key start
LH: loop header
LB: loop body
LE: loop exit
PB: predicated region body
PF: predicated region fallthrough
CT: control target
= control target key end

     0   :  { %s3068_s12 = smov 0   ;;  %s4603_s0 = inlined_call_operand.vmem [shape: f32[512,32], index: 0, kind: input, shape index: {}]   ;;  %s4604_s1 = inlined_call_operand.vmem [shape: f32[32,32], index: 1, kind: input, shape index: {}]   ;;  %s4605_s2 = inlined_call_operand.vmem [shape: f32[1,32], index: 2, kind: input, shape index: {}]   ;;  %s4606_s3 = inlined_call_operand.vmem [shape: f32[64,4], index: 3, kind: output, shape index: {}]  }
   0x1 LB: > { %s2744_s13 = sadd.s32 4294967295, %s3045_s12   ;;  %p2748_p0 = scmp.ge.s32.totalorder %s3045_s12, 1  ;;  %s3045_s12 = sphi %s3068_s12, %s13_s12  }
   0x2   : > { %p138_p1 = scmp.lt.s32.totalorder %s3045_s12, 3 }
   0x4   : > { %p139_p2 = pnand %p2748_p0, %p138_p1 }
   0x6   : > { %142 = sbr.rel (%p139_p2) target bundleno = 1397 (0x575), region = 32 }
   0xd   : > { %v206_v0 = vld [vmem:[%s4604_s1] sm:$0xff]  ;;  %v207_v1 = vld [vmem:[%s4604_s1 + $0x8] sm:$0xff]  ;;  %v208_v2 = vld [vmem:[%s4604_s1 + $0x10] sm:$0xff]  ;;  %s2749_s20 = sshll.u32 %s2744_s13, 5  ;;  %vm217_vm0 = vcmask 261120   ;;  %v4607_v41 = vlaneseq  ;;  %vm827_vm1 = vcmask 253952  }
   0xe   : > { %v2880_v3 = vpack.c.bf16 %v207_v1, %v206_v0  ;;  %v209_v4 = vld [vmem:[%s4604_s1 + $0x18] sm:$0xff]  ;;  %p163_p3 = scmp.lt.s32.totalorder %s2749_s20, 63  ;;  %v3162_v38 = vld [vmem:[%s4605_s2] ss:$0 sm:$0xff]  ;;  %vm1476_vm2 = vcmask 1042434   ;;  %vm1474_vm3 = vcmask 1041409  }
   0xf   : > { %v2884_v5 = vpack.c.bf16 %v209_v4, %v208_v2  ;;  %v3174_v51 = vshrl.u32 %v4607_v41, 7  ;;  %vm1478_vm4 = vcmask 1043459   ;;  %vm1480_vm5 = vcmask 1044484   ;;  %s2751_s29 = sshll.u32 %s2744_s13, 2 }
  0x10   : > { %2881 = vmatprep.subr.bf16.mxu0 %v2880_v3  ;;  %2888 = vmatprep.subr.bf16.mxu1 %v2880_v3  ;;  %s4708_s20 = smov (!%p163_p3, %s2749_s20), 63  ;;  %vm1482_vm6 = vcmask 1045509   ;;  %vm1484_vm9 = vcmask 1046534   ;;  %vm1486_vm10 = vcmask 1047559   ;;  %vm1517_vm12 = vcmask 64512   ;;  %p169_p4 = scmp.lt.s32.totalorder %s2751_s29, 7 }
  0x11   : > { %2883 = vmatpush3.bf16.msra.mxu0 %v2880_v3  ;;  %2890 = vmatpush3.bf16.msra.mxu1 %v2880_v3  ;;  %s2750_s23 = sshll.u32 %s4708_s20, 3  ;;  %4648 = vst [vmem:[#allocation2_spill] sm:$0xff] %v3174_v51  ;;  %v3184_v58 = vsub.s32 0, %v3174_v51  ;;  %vm2659_vm14 = vcmask 7168   ;;  %vm2668_vm15 = vcmask 15368  }
  0x12   : > { %2885 = vmatprep.subr.bf16.mxu0 %v2884_v5  ;;  %2889 = vmatprep.subr.bf16.mxu1 %v2884_v5  ;;  %s3093_s26 = scalar_lea.vmem %s4603_s0, %s2750_s23  ;;  %s4710_s29 = smov (!%p169_p4, %s2751_s29), 7 }
  0x13   : > { %v174_v6 = vld [vmem:[%s3093_s26] sm:$0xff]  ;;  %v175_v8 = vld [vmem:[%s3093_s26 + $0x8] sm:$0xff]  ;;  %v192_v10 = vld [vmem:[%s3093_s26 + $0x90] sm:$0xff]  ;;  %s2752_s30 = sshll.u32 %s4710_s29, 3 }
  0x14   : > { %v190_v7 = vld [vmem:[%s3093_s26 + $0x80] sm:$0xff]  ;;  %v191_v9 = vld [vmem:[%s3093_s26 + $0x88] sm:$0xff]  ;;  %2832 = vmatprep.mubr.msk.f32.mxu0 %vm217_vm0, %v174_v6  ;;  %v176_v11 = vld [vmem:[%s3093_s26 + $0x10] sm:$0xff]  ;;  %s4570_s6 = scalar_lea.vmem %s4606_s3, %s2752_s30 }
  0x15   : > { %2887 = vmatpush3.bf16.msra.mxu0 %v2884_v5  ;;  %2891 = vmatpush3.bf16.msra.mxu1 %v2884_v5  ;;  %v193_v12 = vld [vmem:[%s3093_s26 + $0x98] sm:$0xff]  ;;  %v194_v14 = vld [vmem:[%s3093_s26 + $0xa0] sm:$0xff]  ;;  %v195_v16 = vld [vmem:[%s3093_s26 + $0xa8] sm:$0xff] }
  0x16   : > { %2856 = vmatprep.mubr.msk.f32.mxu1 %vm217_vm0, %v190_v7  ;;  %v177_v13 = vld [vmem:[%s3093_s26 + $0x18] sm:$0xff]  ;;  %v178_v15 = vld [vmem:[%s3093_s26 + $0x20] sm:$0xff]  ;;  %v179_v17 = vld [vmem:[%s3093_s26 + $0x28] sm:$0xff] }
  0x17   : > { %v180_v18 = vld [vmem:[%s3093_s26 + $0x30] sm:$0xff]  ;;  %v181_v20 = vld [vmem:[%s3093_s26 + $0x38] sm:$0xff]  ;;  %v182_v22 = vld [vmem:[%s3093_s26 + $0x40] sm:$0xff] }
  0x18   : > { %2833 = vmatmul.mubr.msk.f32.vlgmr.msra.gmra.mrb[0].mxu0 %vm217_vm0, %v175_v8  ;;  %2857 = vmatmul.mubr.msk.f32.vlgmr.msra.gmra.mrb[0].mxu1 %vm217_vm0, %v191_v9  ;;  %v196_v19 = vld [vmem:[%s3093_s26 + $0xb0] sm:$0xff]  ;;  %v197_v21 = vld [vmem:[%s3093_s26 + $0xb8] sm:$0xff]  ;;  %v198_v23 = vld [vmem:[%s3093_s26 + $0xc0] sm:$0xff] }
  0x19   : > { %2859 = vmatprep.mubr.msk.f32.mxu1 %vm217_vm0, %v192_v10  ;;  %2835 = vmatprep.mubr.msk.f32.mxu0 %vm217_vm0, %v176_v11  ;;  %v183_v24 = vld [vmem:[%s3093_s26 + $0x48] sm:$0xff]  ;;  %v184_v26 = vld [vmem:[%s3093_s26 + $0x50] sm:$0xff]  ;;  %v185_v28 = vld [vmem:[%s3093_s26 + $0x58] sm:$0xff] }
  0x1a   : > { %v199_v25 = vld [vmem:[%s3093_s26 + $0xc8] sm:$0xff]  ;;  %v200_v27 = vld [vmem:[%s3093_s26 + $0xd0] sm:$0xff]  ;;  %v201_v29 = vld [vmem:[%s3093_s26 + $0xd8] sm:$0xff] }
  0x1b   : > { %v186_v30 = vld [vmem:[%s3093_s26 + $0x60] sm:$0xff]  ;;  %v187_v32 = vld [vmem:[%s3093_s26 + $0x68] sm:$0xff]  ;;  %v188_v34 = vld [vmem:[%s3093_s26 + $0x70] sm:$0xff] }
  0x1c   : > { %2860 = vmatmul.mubr.msk.f32.gmra.mrb[2].mxu1 %vm217_vm0, %v193_v12  ;;  %2836 = vmatmul.mubr.msk.f32.gmra.mrb[2].mxu0 %vm217_vm0, %v177_v13  ;;  %v202_v31 = vld [vmem:[%s3093_s26 + $0xe0] sm:$0xff]  ;;  %v203_v33 = vld [vmem:[%s3093_s26 + $0xe8] sm:$0xff]  ;;  %v204_v35 = vld [vmem:[%s3093_s26 + $0xf0] sm:$0xff] }
  0x1d   : > { %2862 = vmatprep.mubr.msk.f32.mxu1 %vm217_vm0, %v194_v14  ;;  %2838 = vmatprep.mubr.msk.f32.mxu0 %vm217_vm0, %v178_v15  ;;  %v189_v36 = vld [vmem:[%s3093_s26 + $0x78] sm:$0xff] }
  0x1e   : > { %v205_v37 = vld [vmem:[%s3093_s26 + $0xf8] sm:$0xff] }
  0x20   : > { %2863 = vmatmul.mubr.msk.f32.gmra.mrb[4].mxu1 %vm217_vm0, %v195_v16  ;;  %2839 = vmatmul.mubr.msk.f32.gmra.mrb[4].mxu0 %vm217_vm0, %v179_v17 }
  0x21   : > { %2841 = vmatprep.mubr.msk.f32.mxu0 %vm217_vm0, %v180_v18  ;;  %2865 = vmatprep.mubr.msk.f32.mxu1 %vm217_vm0, %v196_v19 }
  0x24   : > { %2842 = vmatmul.mubr.msk.f32.gmra.mrb[6].mxu0 %vm217_vm0, %v181_v20  ;;  %2866 = vmatmul.mubr.msk.f32.gmra.mrb[6].mxu1 %vm217_vm0, %v197_v21 }
  0x25   : > { %2844 = vmatprep.mubr.msk.f32.mxu0 %vm217_vm0, %v182_v22  ;;  %2868 = vmatprep.mubr.msk.f32.mxu1 %vm217_vm0, %v198_v23 }
  0x28   : > { %2845 = vmatmul.mubr.msk.f32.gmra.mrb[8].mxu0 %vm217_vm0, %v183_v24  ;;  %2869 = vmatmul.mubr.msk.f32.gmra.mrb[8].mxu1 %vm217_vm0, %v199_v25 }
  0x29   : > { %2847 = vmatprep.mubr.msk.f32.mxu0 %vm217_vm0, %v184_v26  ;;  %2871 = vmatprep.mubr.msk.f32.mxu1 %vm217_vm0, %v200_v27 }
  0x2c   : > { %2848 = vmatmul.mubr.msk.f32.gmra.mrb[10].mxu0 %vm217_vm0, %v185_v28  ;;  %2872 = vmatmul.mubr.msk.f32.gmra.mrb[10].mxu1 %vm217_vm0, %v201_v29 }
  0x2d   : > { %2850 = vmatprep.mubr.msk.f32.mxu0 %vm217_vm0, %v186_v30  ;;  %2874 = vmatprep.mubr.msk.f32.mxu1 %vm217_vm0, %v202_v31 }
  0x30   : > { %2851 = vmatmul.mubr.msk.f32.gmra.mrb[12].mxu0 %vm217_vm0, %v187_v32  ;;  %2875 = vmatmul.mubr.msk.f32.gmra.mrb[12].mxu1 %vm217_vm0, %v203_v33 }
  0x31   : > { %2853 = vmatprep.mubr.msk.f32.mxu0 %vm217_vm0, %v188_v34  ;;  %2877 = vmatprep.mubr.msk.f32.mxu1 %vm217_vm0, %v204_v35 }
  0x34   : > { %2854 = vmatmul.mubr.msk.f32.gmra.mrb[14].mxu0 %vm217_vm0, %v189_v36  ;;  %2878 = vmatmul.mubr.msk.f32.gmra.mrb[14].mxu1 %vm217_vm0, %v205_v37 }
  0xeb   : > { %v2834_v39 = vpop.f32.mrb[0].mxu0  ;;  %v2858_v40 = vpop.f32.mrb[0].mxu1 }
  0xec   : > { %v386_v42 = vadd.f32 %v2834_v39, %v3162_v38  ;;  %v3166_v43 = vadd.f32 %v2858_v40, %v3162_v38  ;;  %v380_v44 = vpop.f32.mrb[1].mxu0  ;;  %v460_v45 = vpop.f32.mrb[1].mxu1 }
  0xed   : > { %v461_v46 = vadd.f32 %v3162_v38, %v460_v45  ;;  %v3177_v52 = vadd.f32 %v3162_v38, %v380_v44 }
  0xee   : > { %v812_v47 = vmul.f32 %v3166_v43, %v3166_v43  ;;  %v796_v48 = vmul.f32 %v386_v42, %v386_v42  ;;  %v546_v2 = vrot.slane %v386_v42, %v3184_v58  ;;  %v610_v13 = vrot.slane %v3166_v43, %v3184_v58 }
  0xef   : > { %v2861_v49 = vpop.f32.mrb[2].mxu1  ;;  %v3171_v50 = vpop.f32.mrb[2].mxu0  ;;  %v811_v55 = vmul.f32 %v461_v46, %v461_v46  ;;  %v795_v63 = vmul.f32 %v3177_v52, %v3177_v52  ;;  %v606_v7 = vrot.slane %v461_v46, %v3184_v58  ;;  %v542_v26 = vrot.slane %v3177_v52, %v3184_v58 }
  0xf0   : > { %v879_v53 = vsel %vm827_vm1, %v812_v47, 0.0  ;;  %v831_v54 = vsel %vm827_vm1, %v796_v48, 0.0  ;;  %v3181_v56 = vpop.f32.mrb[3].mxu1  ;;  %v390_v57 = vpop.f32.mrb[3].mxu0  ;;  %v927_v61 = vsel %vm217_vm0, %v796_v48, 0.0  ;;  %v975_v5 = vsel %vm217_vm0, %v812_v47, 0.0 }
  0xf1   : > { %880 = vadd.xlane.f32.xlu1 %v879_v53  ;;  %832 = vadd.xlane.f32.xlu0 %v831_v54  ;;  %v876_v62 = vsel %vm827_vm1, %v811_v55, 0.0  ;;  %v924_v6 = vsel %vm217_vm0, %v795_v63, 0.0  ;;  %v3207_v12 = vadd.f32 %v2861_v49, %v3162_v38  ;;  %v972_v16 = vsel %vm217_vm0, %v811_v55, 0.0 }
  0xf2   : > { %v828_v17 = vsel %vm827_vm1, %v795_v63, 0.0  ;;  %v668_v18 = vmul.f32 %v546_v2, %v386_v42  ;;  %v683_v19 = vmul.f32 %v606_v7, %v461_v46  ;;  %v3224_v25 = vadd.f32 %v3162_v38, %v390_v57 }
  0xf3   : > { %v3186_v59 = vpop.f32.mrb[4].mxu1  ;;  %v3188_v60 = vpop.f32.mrb[4].mxu0  ;;  %v3215_v22 = vmul.f32 %v3207_v12, %v3207_v12  ;;  %v684_v33 = vmul.f32 %v610_v13, %v3166_v43  ;;  %v396_v46 = vadd.f32 %v3171_v50, %v3162_v38  ;;  %v667_v47 = vmul.f32 %v542_v26, %v3177_v52 }
  0xf4   : > { %v480_v0 = vpop.f32.mrb[5].mxu1  ;;  %v400_v1 = vpop.f32.mrb[5].mxu0  ;;  %v702_v31 = vsel %vm217_vm0, %v668_v18, 0.0  ;;  %v747_v32 = vsel %vm217_vm0, %v683_v19, 0.0  ;;  %v797_v39 = vmul.f32 %v3224_v25, %v3224_v25 }
  0xf5   : > { %928 = vadd.xlane.f32.xlu1 %v927_v61  ;;  %877 = vadd.xlane.f32.xlu0 %v876_v62  ;;  %v3201_v8 = vadd.f32 %v3162_v38, %v400_v1  ;;  %v3238_v34 = vadd.f32 %v3162_v38, %v480_v0  ;;  %v981_v37 = vsel %vm217_vm0, %v3215_v22, 0.0  ;;  %v750_v55 = vsel %vm217_vm0, %v684_v33, 0.0 }
  0xf6   : > { %v834_v0 = vsel %vm827_vm1, %v797_v39, 0.0  ;;  %v930_v18 = vsel %vm217_vm0, %v797_v39, 0.0 }
  0xf7   : > { %v3195_v3 = vpop.f32.mrb[6].mxu0  ;;  %v2867_v4 = vpop.f32.mrb[6].mxu1  ;;  %v3256_v44 = vmul.f32 %v3201_v8, %v3201_v8  ;;  %v3260_v45 = vmul.f32 %v3238_v34, %v3238_v34 }
  0xf8   : > { %v410_v9 = vpop.f32.mrb[7].mxu0  ;;  %v490_v10 = vpop.f32.mrb[7].mxu1  ;;  %v3229_v27 = vadd.f32 %v2867_v4, %v3162_v38  ;;  %v798_v4 = vmul.f32 %v396_v46, %v396_v46 }
  0xf9   : > { %976 = vadd.xlane.f32.xlu1 %v975_v5  ;;  %925 = vadd.xlane.f32.xlu0 %v924_v6  ;;  %v3204_v11 = vadd.f32 %v3162_v38, %v410_v9  ;;  %v3232_v28 = vadd.f32 %v3162_v38, %v490_v10  ;;  %v3278_v61 = vsel %vm827_vm1, %v3256_v44, 0.0  ;;  %v3282_v50 = vsel %vm827_vm1, %v3260_v45, 0.0 }
  0xfa   : > { %4649 = vst [vmem:[#allocation3_spill] sm:$0xff] %v3229_v27  ;;  %v3301_v6 = vmul.f32 %v3229_v27, %v3229_v27  ;;  %v699_v9 = vsel %vm217_vm0, %v667_v47, 0.0  ;;  %v554_v10 = vrot.slane %v396_v46, %v3184_v58  ;;  %v933_v51 = vsel %vm217_vm0, %v798_v4, 0.0 }
  0xfb   : > { %v2846_v14 = vpop.f32.mrb[8].mxu0  ;;  %v2870_v15 = vpop.f32.mrb[8].mxu1  ;;  %4650 = vst [vmem:[#allocation4_spill] sm:$0xff] %v3232_v28 }
  0xfc   : > { %v420_v20 = vpop.f32.mrb[9].mxu0  ;;  %v500_v21 = vpop.f32.mrb[9].mxu1  ;;  %v3218_v23 = vadd.f32 %v2846_v14, %v3162_v38  ;;  %v3245_v40 = vadd.f32 %v2870_v15, %v3162_v38  ;;  %v3311_v15 = vsel %vm827_vm1, %v3301_v6, 0.0 }
  0xfd   : > { %973 = vadd.xlane.f32.xlu0 %v972_v16  ;;  %829 = vadd.xlane.f32.xlu1 %v828_v17  ;;  %v3221_v24 = vadd.f32 %v3162_v38, %v420_v20  ;;  %v3248_v42 = vadd.f32 %v3162_v38, %v500_v21  ;;  %v3319_v17 = vmul.f32 %v3204_v11, %v3204_v11  ;;  %v837_v20 = vsel %vm827_vm1, %v798_v4, 0.0 }
  0xfe   : > { %v3252_v43 = vmul.f32 %v3218_v23, %v3218_v23 }
  0xff   : > { %v2849_v29 = vpop.f32.mrb[10].mxu0  ;;  %v2873_v30 = vpop.f32.mrb[10].mxu1  ;;  %v3286_v63 = vmul.f32 %v3248_v42, %v3248_v42  ;;  %v3333_v26 = vsel %vm827_vm1, %v3319_v17, 0.0 }
 0x100   : > { %v430_v35 = vpop.f32.mrb[11].mxu0  ;;  %v510_v36 = vpop.f32.mrb[11].mxu1  ;;  %v3266_v48 = vadd.f32 %v2849_v29, %v3162_v38  ;;  %v3274_v57 = vsel %vm827_vm1, %v3252_v43, 0.0  ;;  %v3290_v1 = vadd.f32 %v2873_v30, %v3162_v38  ;;  %v3337_v29 = vmul.f32 %v3232_v28, %v3232_v28 }
 0x101   : > { %703 = vadd.xlane.f32.xlu0 %v702_v31  ;;  %748 = vadd.xlane.f32.xlu1 %v747_v32  ;;  %v3269_v49 = vadd.f32 %v3162_v38, %v430_v35  ;;  %v3293_v2 = vadd.f32 %v3162_v38, %v510_v36  ;;  %v3297_v5 = vsel %vm827_vm1, %v3286_v63, 0.0  ;;  %v670_v31 = vmul.f32 %v554_v10, %v396_v46 }
 0x102   : > { %4651 = vst [vmem:[#allocation5_spill] sm:$0xff] %v3290_v1  ;;  %v3307_v13 = vmul.f32 %v3266_v48, %v3266_v48  ;;  %v3315_v16 = vmul.f32 %v3290_v1, %v3290_v1  ;;  %v550_v32 = vrot.slane %v3224_v25, %v3184_v58  ;;  %v3351_v36 = vsel %vm827_vm1, %v3337_v29, 0.0 }
 0x103   : > { %v2852_v53 = vpop.f32.mrb[12].mxu0  ;;  %v2876_v54 = vpop.f32.mrb[12].mxu1  ;;  %v3343_v33 = vmul.f32 %v3269_v49, %v3269_v49  ;;  %v3347_v35 = vmul.f32 %v3293_v2, %v3293_v2  ;;  %v3361_v46 = vadd.f32 %v3186_v59, %v3162_v38  ;;  %v708_v10 = vsel %vm217_vm0, %v670_v31, 0.0 }
 0x104   : > { %v440_v52 = vpop.f32.mrb[13].mxu0  ;;  %v520_v62 = vpop.f32.mrb[13].mxu1  ;;  %v3324_v19 = vsel %vm827_vm1, %v3307_v13, 0.0  ;;  %v3329_v21 = vsel %vm827_vm1, %v3315_v16, 0.0 }
 0x105   : > { %751 = vadd.xlane.f32.xlu0 %v750_v55  ;;  %982 = vadd.xlane.f32.xlu1 %v981_v37  ;;  %v3354_v37 = vadd.f32 %v2852_v53, %v3162_v38  ;;  %v3357_v39 = vadd.f32 %v3162_v38, %v440_v52  ;;  %4654 = vst [vmem:[#allocation8_spill] sm:$0xff] %v3361_v46  ;;  %v3365_v47 = vsel %vm827_vm1, %v3343_v33, 0.0  ;;  %v3369_v55 = vsel %vm827_vm1, %v3347_v35, 0.0 }
 0x106   : > { %v885_v53 = vsel %vm827_vm1, %v3215_v22, 0.0  ;;  %v3375_v52 = vmul.f32 %v3245_v40, %v3245_v40  ;;  %v3381_v59 = vadd.f32 %v3162_v38, %v520_v62  ;;  %v3391_v22 = vmul.f32 %v3221_v24, %v3221_v24 }
 0x107   : > { %v2855_v7 = vpop.f32.mrb[14].mxu0  ;;  %v2879_v30 = vpop.f32.mrb[14].mxu1  ;;  %4652 = vst [vmem:[#allocation6_spill] sm:$0xff] %v3354_v37  ;;  %4653 = vst [vmem:[#allocation7_spill] sm:$0xff] %v3357_v39  ;;  %v816_v31 = vmul.f32 %v3361_v46, %v3361_v46  ;;  %v3423_v27 = vmul.f32 %v3357_v39, %v3357_v39 }
 0x108   : > { %v450_v14 = vpop.f32.mrb[15].mxu0  ;;  %4656 = vst [vmem:[#allocation10_spill] sm:$0xff] %v3381_v59  ;;  %v3426_v46 = vadd.f32 %v2855_v7, %v3162_v38  ;;  %v3438_v4 = vmul.f32 %v3381_v59, %v3381_v59 }
 0x109   : > { %835 = vadd.xlane.f32.xlu1 %v834_v0  ;;  %700 = vadd.xlane.f32.xlu0 %v699_v9  ;;  %v530_v0 = vpop.f32.mrb[15].mxu1  ;;  %v3378_v9 = vadd.f32 %v2876_v54, %v3162_v38  ;;  %v3395_v54 = vsel %vm827_vm1, %v3375_v52, 0.0  ;;  %4657 = vst [vmem:[#allocation11_spill] sm:$0xff] %v3423_v27  ;;  %v891_v28 = vsel %vm827_vm1, %v816_v31, 0.0 }
 0x10a   : > { %4658 = vst [vmem:[#allocation12_spill] sm:$0xff] %v3426_v46  ;;  %4661 = vst [vmem:[#allocation15_spill] sm:$0xff] %v3438_v4 }
 0x10b   : > { %4655 = vst [vmem:[#allocation9_spill] sm:$0xff] %v3378_v9  ;;  %v3399_v62 = vmul.f32 %v3378_v9, %v3378_v9 }
 0x10d   : > { %931 = vadd.xlane.f32.xlu1 %v930_v18  ;;  %838 = vadd.xlane.f32.xlu0 %v837_v20  ;;  %v669_v18 = vmul.f32 %v550_v32, %v3224_v25  ;;  %v3387_v20 = vmul.f32 %v3354_v37, %v3354_v37  ;;  %v471_v25 = vadd.f32 %v3162_v38, %v3181_v56  ;;  %v3417_v41 = vsel %vm827_vm1, %v3399_v62, 0.0 }
 0x10e   : > { %v3450_v37 = vsel %vm827_vm1, %v3438_v4, 0.0  ;;  %v622_v4 = vrot.slane %v3238_v34, %v3184_v58 }
 0x10f   : > { %v3407_v32 = vsel %vm827_vm1, %v3387_v20, 0.0  ;;  %v705_v56 = vsel %vm217_vm0, %v669_v18, 0.0  ;;  %v813_v9 = vmul.f32 %v471_v25, %v471_v25  ;;  %v3434_v18 = vsel %vm827_vm1, %v3423_v27, 0.0 }
 0x110   : > { %4660 = vst [vmem:[#allocation14_spill] sm:$0xff] %v3434_v18  ;;  %v3460_v27 = vadd.f32 %v3162_v38, %v530_v0  ;;  %v614_v0 = vrot.slane %v471_v25, %v3184_v58 }
 0x111   : > { %709 = vadd.xlane.f32.xlu1 %v708_v10  ;;  %886 = vadd.xlane.f32.xlu0 %v885_v53  ;;  %v3411_v53 = vsel %vm827_vm1, %v3391_v22, 0.0  ;;  %v406_v10 = vadd.f32 %v3188_v60, %v3162_v38  ;;  %v3429_v60 = vadd.f32 %v3162_v38, %v450_v14  ;;  %v882_v7 = vsel %vm827_vm1, %v813_v9, 0.0 }
 0x112   : > { %4665 = vst [vmem:[#allocation19_spill] sm:$0xff] %v3460_v27  ;;  %v978_v39 = vsel %vm217_vm0, %v813_v9, 0.0 }
 0x113   : > { %4659 = vst [vmem:[#allocation13_spill] sm:$0xff] %v3429_v60  ;;  %v800_v1 = vmul.f32 %v406_v10, %v406_v10  ;;  %v562_v14 = vrot.slane %v406_v10, %v3184_v58 }
 0x115   : > { %706 = vadd.xlane.f32.xlu1 %v705_v56  ;;  %934 = vadd.xlane.f32.xlu0 %v933_v51  ;;  %v3442_v51 = vmul.f32 %v3426_v46, %v3426_v46  ;;  %v618_v56 = vrot.slane %v3207_v12, %v3184_v58  ;;  %v3457_v46 = vadd.f32 %v2879_v30, %v3162_v38  ;;  %v939_v18 = vsel %vm217_vm0, %v800_v1, 0.0 }
 0x116   : > { %v672_v30 = vmul.f32 %v562_v14, %v406_v10 }
 0x117   : > { %4662 = vst [vmem:[#allocation16_spill] sm:$0xff] %v3442_v51  ;;  %v3454_v59 = vsel %vm827_vm1, %v3442_v51, 0.0  ;;  %4664 = vst [vmem:[#allocation18_spill] sm:$0xff] %v3457_v46  ;;  %v686_v51 = vmul.f32 %v618_v56, %v3207_v12  ;;  %v416_v12 = vadd.f32 %v3195_v3, %v3162_v38  ;;  %v685_v56 = vmul.f32 %v614_v0, %v471_v25  ;;  %v4669_v0 = vld [vmem:[#allocation14_spill] sm:$0xff] }
 0x118   : > { %4663 = vst [vmem:[#allocation17_spill] sm:$0xff] %v3454_v59  ;;  %v3478_v59 = vmul.f32 %v3429_v60, %v3429_v60  ;;  %v714_v14 = vsel %vm217_vm0, %v672_v30, 0.0  ;;  %v843_v3 = vsel %vm827_vm1, %v800_v1, 0.0  ;;  %v987_v25 = vsel %vm217_vm0, %v816_v31, 0.0 }
 0x119   : > { %892 = vadd.xlane.f32.xlu1 %v891_v28  ;;  %883 = vadd.xlane.f32.xlu0 %v882_v7  ;;  %v3468_v28 = vmul.f32 %v3457_v46, %v3457_v46  ;;  %v3472_v7 = vmul.f32 %v3460_v27, %v3460_v27  ;;  %v802_v27 = vmul.f32 %v416_v12, %v416_v12  ;;  %v936_v1 = vsel %vm217_vm0, %v3256_v44, 0.0 }
 0x11a   : > { %4667 = vst [vmem:[#allocation21_spill] sm:$0xff] %v3478_v59  ;;  %v3490_v10 = vsel %vm827_vm1, %v3478_v59, 0.0  ;;  %v570_v59 = vrot.slane %v416_v12, %v3184_v58  ;;  %v558_v31 = vrot.slane %v3201_v8, %v3184_v58  ;;  %v638_v44 = vrot.slane %v3248_v42, %v3184_v58 }
 0x11b   : > { %4666 = vst [vmem:[#allocation20_spill] sm:$0xff] %v3472_v7  ;;  %v3482_v9 = vsel %vm827_vm1, %v3468_v28, 0.0  ;;  %v3486_v46 = vsel %vm827_vm1, %v3472_v7, 0.0  ;;  %v753_v7 = vsel %vm217_vm0, %v685_v56, 0.0  ;;  %v849_v38 = vsel %vm827_vm1, %v802_v27, 0.0 }
 0x11c   : > { %v674_v30 = vmul.f32 %v570_v59, %v416_v12  ;;  %v578_v59 = vrot.slane %v3218_v23, %v3184_v58  ;;  %vm2683_vm1 = vcmask 31768  }
 0x11d   : > { %940 = vadd.xlane.f32.xlu1 %v939_v18  ;;  %979 = vadd.xlane.f32.xlu0 %v978_v39  ;;  %v756_v18 = vsel %vm217_vm0, %v686_v51, 0.0  ;;  %v687_v39 = vmul.f32 %v622_v4, %v3238_v34  ;;  %v691_v51 = vmul.f32 %v638_v44, %v3248_v42  ;;  %v957_v42 = vsel %vm217_vm0, %v3307_v13, 0.0 }
 0x11e   : > { %v720_v34 = vsel %vm217_vm0, %v674_v30, 0.0  ;;  %v990_v13 = vsel %vm217_vm0, %v3337_v29, 0.0 }
 0x11f   : > { %v759_v60 = vsel %vm217_vm0, %v687_v39, 0.0 }
 0x121   : > { %715 = vadd.xlane.f32.xlu1 %v714_v14  ;;  %757 = vadd.xlane.f32.xlu0 %v756_v18  ;;  %v4670_v14 = vld [vmem:[#allocation15_spill] sm:$0xff] }
 0x122   : > { %v1008_v18 = vsel %vm217_vm0, %v4670_v14, 0.0 }
 0x125   : > { %760 = vadd.xlane.f32.xlu1 %v759_v60  ;;  %754 = vadd.xlane.f32.xlu0 %v753_v7  ;;  %v951_v60 = vsel %vm217_vm0, %v3252_v43, 0.0  ;;  %v996_v43 = vsel %vm217_vm0, %v3286_v63, 0.0  ;;  %v1005_v63 = vsel %vm217_vm0, %v3315_v16, 0.0  ;;  %v586_v16 = vrot.slane %v3266_v48, %v3184_v58  ;;  %v4668_v7 = vld [vmem:[#allocation7_spill] sm:$0xff] }
 0x129   : > { %850 = vadd.xlane.f32.xlu1 %v849_v38  ;;  %844 = vadd.xlane.f32.xlu0 %v843_v3  ;;  %v4671_v3 = vld [vmem:[#allocation6_spill] sm:$0xff] }
 0x12a   : > { %v594_v30 = vrot.slane %v4671_v3, %v3184_v58 }
 0x12d   : > { %721 = vadd.xlane.f32.xlu1 %v720_v34  ;;  %988 = vadd.xlane.f32.xlu0 %v987_v25 }
 0x131   : > { %856 = vadd.xlane.f32.xlu1 %v3274_v57  ;;  %841 = vadd.xlane.f32.xlu0 %v3278_v61  ;;  %v984_v57 = vsel %vm217_vm0, %v3260_v45, 0.0  ;;  %v676_v61 = vmul.f32 %v578_v59, %v3218_v23  ;;  %v771_v45 = vsel %vm217_vm0, %v691_v51, 0.0  ;;  %v993_v23 = vsel %vm217_vm0, %v3301_v6, 0.0 }
 0x132   : > { %v566_v6 = vrot.slane %v3204_v11, %v3184_v58  ;;  %v680_v59 = vmul.f32 %v594_v30, %v4671_v3 }
 0x133   : > { %v726_v4 = vsel %vm217_vm0, %v676_v61, 0.0 }
 0x135   : > { %952 = vadd.xlane.f32.xlu1 %v951_v60  ;;  %889 = vadd.xlane.f32.xlu0 %v3282_v50  ;;  %v671_v50 = vmul.f32 %v558_v31, %v3201_v8  ;;  %v945_v8 = vsel %vm217_vm0, %v802_v27, 0.0  ;;  %v942_v27 = vsel %vm217_vm0, %v3319_v17, 0.0  ;;  %v954_v17 = vsel %vm217_vm0, %v3343_v33, 0.0  ;;  %v4672_v60 = vld [vmem:[#allocation11_spill] sm:$0xff]  ;;  %v4673_v31 = vld [vmem:[#allocation10_spill] sm:$0xff] }
 0x136   : > { %v999_v33 = vsel %vm217_vm0, %v3375_v52, 0.0  ;;  %v963_v52 = vsel %vm217_vm0, %v3387_v20, 0.0 }
 0x139   : > { %901 = vadd.xlane.f32.xlu1 %v3297_v5  ;;  %937 = vadd.xlane.f32.xlu0 %v936_v1  ;;  %v711_v5 = vsel %vm217_vm0, %v671_v50, 0.0  ;;  %v960_v1 = vsel %vm217_vm0, %v4672_v60, 0.0 }
 0x13d   : > { %997 = vadd.xlane.f32.xlu1 %v996_v43  ;;  %985 = vadd.xlane.f32.xlu0 %v984_v57  ;;  %v654_v57 = vrot.slane %v4673_v31, %v3184_v58  ;;  %v4674_v43 = vld [vmem:[#allocation17_spill] sm:$0xff] }
 0x141   : > { %727 = vadd.xlane.f32.xlu1 %v726_v4  ;;  %712 = vadd.xlane.f32.xlu0 %v711_v5  ;;  %v738_v4 = vsel %vm217_vm0, %v680_v59, 0.0  ;;  %v695_v5 = vmul.f32 %v654_v57, %v4673_v31 }
 0x145   : > { %772 = vadd.xlane.f32.xlu1 %v771_v45  ;;  %898 = vadd.xlane.f32.xlu0 %v3311_v15  ;;  %v673_v15 = vmul.f32 %v566_v6, %v3204_v11 }
 0x149   : > { %862 = vadd.xlane.f32.xlu1 %v3324_v19  ;;  %946 = vadd.xlane.f32.xlu0 %v945_v8  ;;  %v717_v19 = vsel %vm217_vm0, %v673_v15, 0.0  ;;  %v783_v8 = vsel %vm217_vm0, %v695_v5, 0.0 }
 0x14d   : > { %910 = vadd.xlane.f32.xlu1 %v3329_v21  ;;  %994 = vadd.xlane.f32.xlu0 %v993_v23  ;;  %v678_v21 = vmul.f32 %v586_v16, %v3266_v48  ;;  %v642_v48 = vrot.slane %v3245_v40, %v3184_v58  ;;  %v4677_v16 = vld [vmem:[#allocation21_spill] sm:$0xff] }
 0x14f   : > { %v732_v11 = vsel %vm217_vm0, %v678_v21, 0.0 }
 0x151   : > { %958 = vadd.xlane.f32.xlu1 %v957_v42  ;;  %847 = vadd.xlane.f32.xlu0 %v3333_v26  ;;  %v646_v26 = vrot.slane %v3293_v2, %v3184_v58 }
 0x153   : > { %v693_v29 = vmul.f32 %v646_v26, %v3293_v2  ;;  %v948_v2 = vsel %vm217_vm0, %v3391_v22, 0.0  ;;  %v1011_v22 = vsel %vm217_vm0, %v3399_v62, 0.0 }
 0x155   : > { %1006 = vadd.xlane.f32.xlu1 %v1005_v63  ;;  %895 = vadd.xlane.f32.xlu0 %v3351_v36  ;;  %v777_v36 = vsel %vm217_vm0, %v693_v29, 0.0  ;;  %v1017_v63 = vsel %vm217_vm0, %v3468_v28, 0.0  ;;  %v4679_v28 = vld [vmem:[#allocation8_spill] sm:$0xff] }
 0x156   : > { %v626_v26 = vrot.slane %v4679_v28, %v3184_v58  ;;  %v4680_v29 = vld [vmem:[#allocation20_spill] sm:$0xff] }
 0x159   : > { %859 = vadd.xlane.f32.xlu1 %v3365_v47  ;;  %943 = vadd.xlane.f32.xlu0 %v942_v27  ;;  %v692_v47 = vmul.f32 %v642_v48, %v3245_v40  ;;  %v4676_v27 = vld [vmem:[#allocation5_spill] sm:$0xff] }
 0x15a   : > { %v650_v6 = vrot.slane %v4676_v27, %v3184_v58 }
 0x15d   : > { %907 = vadd.xlane.f32.xlu1 %v3369_v55  ;;  %991 = vadd.xlane.f32.xlu0 %v990_v13  ;;  %v574_v55 = vrot.slane %v3221_v24, %v3184_v58 }
 0x161   : > { %955 = vadd.xlane.f32.xlu1 %v954_v17  ;;  %718 = vadd.xlane.f32.xlu0 %v717_v19  ;;  %v694_v17 = vmul.f32 %v650_v6, %v4676_v27  ;;  %v4678_v19 = vld [vmem:[#allocation4_spill] sm:$0xff] }
 0x162   : > { %v630_v21 = vrot.slane %v4678_v19, %v3184_v58 }
 0x165   : > { %733 = vadd.xlane.f32.xlu1 %v732_v11  ;;  %904 = vadd.xlane.f32.xlu0 %v3395_v54  ;;  %v774_v54 = vsel %vm217_vm0, %v692_v47, 0.0  ;;  %v689_v47 = vmul.f32 %v630_v21, %v4678_v19 }
 0x169   : > { %778 = vadd.xlane.f32.xlu1 %v777_v36  ;;  %1000 = vadd.xlane.f32.xlu0 %v999_v33  ;;  %v1014_v36 = vsel %vm217_vm0, %v4680_v29, 0.0  ;;  %v4681_v33 = vld [vmem:[#allocation3_spill] sm:$0xff] }
 0x16a   : > { %v634_v48 = vrot.slane %v4681_v33, %v3184_v58 }
 0x16d   : > { %868 = vadd.xlane.f32.xlu1 %v3407_v32  ;;  %853 = vadd.xlane.f32.xlu0 %v3411_v53  ;;  %v675_v32 = vmul.f32 %v574_v55, %v3221_v24  ;;  %v582_v53 = vrot.slane %v3269_v49, %v3184_v58  ;;  %v590_v24 = vrot.slane %v4668_v7, %v3184_v58 }
 0x16e   : > { %v688_v55 = vmul.f32 %v626_v26, %v4679_v28 }
 0x16f   : > { %v723_v40 = vsel %vm217_vm0, %v675_v32, 0.0  ;;  %v677_v20 = vmul.f32 %v582_v53, %v3269_v49  ;;  %v679_v56 = vmul.f32 %v590_v24, %v4668_v7  ;;  %v4684_v53 = vld [vmem:[#allocation12_spill] sm:$0xff]  ;;  %v690_v24 = vmul.f32 %v634_v48, %v4681_v33 }
 0x170   : > { %v762_v7 = vsel %vm217_vm0, %v688_v55, 0.0 }
 0x171   : > { %916 = vadd.xlane.f32.xlu1 %v3417_v41  ;;  %949 = vadd.xlane.f32.xlu0 %v948_v2  ;;  %v1002_v41 = vsel %vm217_vm0, %v3347_v35, 0.0  ;;  %v729_v39 = vsel %vm217_vm0, %v677_v20, 0.0  ;;  %v735_v38 = vsel %vm217_vm0, %v679_v56, 0.0  ;;  %v780_v2 = vsel %vm217_vm0, %v694_v17, 0.0  ;;  %v4685_v56 = vld [vmem:[#allocation18_spill] sm:$0xff] }
 0x172   : > { %v765_v20 = vsel %vm217_vm0, %v689_v47, 0.0  ;;  %v768_v3 = vsel %vm217_vm0, %v690_v24, 0.0 }
 0x175   : > { %964 = vadd.xlane.f32.xlu1 %v963_v52  ;;  %775 = vadd.xlane.f32.xlu0 %v774_v54  ;;  %v4682_v52 = vld [vmem:[#allocation9_spill] sm:$0xff] }
 0x176   : > { %v658_v54 = vrot.slane %v4682_v52, %v3184_v58 }
 0x179   : > { %1012 = vadd.xlane.f32.xlu1 %v1011_v22  ;;  %724 = vadd.xlane.f32.xlu0 %v723_v40  ;;  %v4683_v22 = vld [vmem:[#allocation13_spill] sm:$0xff] }
 0x17a   : > { %v598_v40 = vrot.slane %v4683_v22, %v3184_v58 }
 0x17d   : > { %865 = vadd.xlane.f32.xlu1 %v4669_v0  ;;  %1003 = vadd.xlane.f32.xlu0 %v1002_v41  ;;  %v602_v41 = vrot.slane %v4684_v53, %v3184_v58  ;;  %v696_v0 = vmul.f32 %v658_v54, %v4682_v52 }
 0x17e   : > { %v3588_v12 = vpop.xlane.xlu1 %880  ;;  %v3590_v62 = vpop.xlane.xlu0 %832 }
 0x17f   : > { %v786_v30 = vsel %vm217_vm0, %v696_v0, 0.0  ;;  %v682_v60 = vmul.f32 %v602_v41, %v4684_v53 }
 0x181   : > { %1009 = vadd.xlane.f32.xlu1 %v1008_v18  ;;  %730 = vadd.xlane.f32.xlu0 %v729_v39  ;;  %v681_v39 = vmul.f32 %v598_v40, %v4683_v22  ;;  %v1027_v40 = vrot.slane %v3590_v62, %v3184_v58 }
 0x182   : > { %v3596_v49 = vpop.xlane.xlu1 %928  ;;  %v3598_v35 = vpop.xlane.xlu0 %877 }
 0x185   : > { %736 = vadd.xlane.f32.xlu1 %v735_v38  ;;  %913 = vadd.xlane.f32.xlu0 %v3450_v37  ;;  %v4675_v37 = vld [vmem:[#allocation16_spill] sm:$0xff]  ;;  %v666_v38 = vrot.slane %v4685_v56, %v3184_v58 }
 0x186   : > { %v3604_v34 = vpop.xlane.xlu1 %976  ;;  %v3606_v25 = vpop.xlane.xlu0 %925  ;;  %v969_v44 = vsel %vm217_vm0, %v4675_v37, 0.0  ;;  %v744_v37 = vsel %vm217_vm0, %v682_v60, 0.0 }
 0x189   : > { %874 = vadd.xlane.f32.xlu1 %v4674_v43  ;;  %961 = vadd.xlane.f32.xlu0 %v960_v1  ;;  %v4686_v1 = vld [vmem:[#allocation19_spill] sm:$0xff]  ;;  %v741_v43 = vsel %vm217_vm0, %v681_v39, 0.0 }
 0x18a   : > { %v3614_v61 = vpop.xlane.xlu0 %973  ;;  %v3616_v50 = vpop.xlane.xlu1 %829  ;;  %v662_v59 = vrot.slane %v4686_v1, %v3184_v58 }
 0x18b   : > { %v1023_v53 = vrot.slane %v3616_v50, %v3184_v58 }
 0x18d   : > { %970 = vadd.xlane.f32.xlu1 %v969_v44  ;;  %739 = vadd.xlane.f32.xlu0 %v738_v4  ;;  %v698_v44 = vmul.f32 %v666_v38, %v4685_v56  ;;  %v697_v4 = vmul.f32 %v662_v59, %v4686_v1  ;;  %v1148_v0 = vmul.f32 %v1023_v53, %v3606_v25 }
 0x18e   : > { %v3622_v51 = vpop.xlane.xlu0 %703  ;;  %v3624_v45 = vpop.xlane.xlu1 %748 }
 0x18f   : > { %v789_v27 = vsel %vm217_vm0, %v697_v4, 0.0  ;;  %v1180_v1 = vmax.f32 %v1148_v0, 1e-16 }
 0x191   : > { %784 = vadd.xlane.f32.xlu1 %v783_v8  ;;  %922 = vadd.xlane.f32.xlu0 %v3482_v9  ;;  %v966_v9 = vsel %vm217_vm0, %v4677_v16, 0.0 }
 0x192   : > { %v3628_v23 = vpop.xlane.xlu0 %751  ;;  %v3630_v42 = vpop.xlane.xlu1 %982 }
 0x195   : > { %919 = vadd.xlane.f32.xlu1 %v3486_v46  ;;  %1018 = vadd.xlane.f32.xlu0 %v1017_v63  ;;  %v792_v63 = vsel %vm217_vm0, %v698_v44, 0.0  ;;  %vm2678_vm0 = vcmask 23568  }
 0x196   : > { %v3637_v13 = vpop.xlane.xlu1 %835  ;;  %v3639_v15 = vpop.xlane.xlu0 %700 }
 0x197   : > { %v1031_v24 = vrot.slane %v3637_v13, %v3184_v58 }
 0x199   : > { %967 = vadd.xlane.f32.xlu1 %v966_v9  ;;  %871 = vadd.xlane.f32.xlu0 %v3490_v10 }
 0x19a   : > { %v3649_v46 = vpop.xlane.xlu1 %931  ;;  %v3651_v11 = vpop.xlane.xlu0 %838 }
 0x19b   : > { %v1035_v39 = vrot.slane %v3651_v11, %v3184_v58  ;;  %v1150_v56 = vmul.f32 %v1031_v24, %v3649_v46 }
 0x19d   : > { %1015 = vadd.xlane.f32.xlu1 %v1014_v36  ;;  %781 = vadd.xlane.f32.xlu0 %v780_v2  ;;  %v1182_v59 = vmax.f32 %v1150_v56, 1e-16 }
 0x19e   : > { %v3662_v10 = vpop.xlane.xlu1 %709  ;;  %v3664_v32 = vpop.xlane.xlu0 %886 }
 0x1a1   : > { %766 = vadd.xlane.f32.xlu1 %v765_v20  ;;  %763 = vadd.xlane.f32.xlu0 %v762_v7  ;;  %v1149_v7 = vmul.f32 %v1027_v40, %v3596_v49 }
 0x1a2   : > { %v3674_v14 = vpop.xlane.xlu1 %706  ;;  %v935_v18 = vpop.xlane.xlu0 %934 }
 0x1a3   : > { %v1151_v38 = vmul.f32 %v1035_v39, %v935_v18 }
 0x1a5   : > { %769 = vadd.xlane.f32.xlu1 %v768_v3  ;;  %787 = vadd.xlane.f32.xlu0 %v786_v30  ;;  %v1181_v30 = vmax.f32 %v1149_v7, 1e-16  ;;  %v1183_v13 = vmax.f32 %v1151_v38, 1e-16 }
 0x1a6   : > { %v3684_v31 = vpop.xlane.xlu1 %892  ;;  %v3686_v57 = vpop.xlane.xlu0 %883 }
 0x1a7   : > { %2903 = vrsqrt.f32 %v1181_v30 }
 0x1a8   : > { %2905 = vrsqrt.f32 %v1180_v1 }
 0x1a9   : > { %742 = vadd.xlane.f32.xlu1 %v741_v43  ;;  %745 = vadd.xlane.f32.xlu0 %v744_v37  ;;  %2907 = vrsqrt.f32 %v1182_v59 }
 0x1aa   : > { %v941_v5 = vpop.xlane.xlu1 %940  ;;  %v3692_v8 = vpop.xlane.xlu0 %979  ;;  %2909 = vrsqrt.f32 %v1183_v13 }
 0x1ad   : > { %793 = vadd.xlane.f32.xlu1 %v792_v63  ;;  %790 = vadd.xlane.f32.xlu0 %v789_v27 }
 0x1ae   : > { %v3696_v6 = vpop.xlane.xlu1 %715  ;;  %v3698_v16 = vpop.xlane.xlu0 %757 }
 0x1b2   : > { %v3700_v9 = vpop.xlane.xlu1 %760  ;;  %v3702_v17 = vpop.xlane.xlu0 %754 }
 0x1b6   : > { %v851_v19 = vpop.xlane.xlu1 %850  ;;  %v845_v21 = vpop.xlane.xlu0 %844 }
 0x1b7   : > { %v1043_v49 = vrot.slane %v845_v21, %v3184_v58  ;;  %v1051_v46 = vrot.slane %v851_v19, %v3184_v58 }
 0x1b9   : > { %v1153_v18 = vmul.f32 %v1043_v49, %v941_v5 }
 0x1ba   : > { %v3704_v28 = vpop.xlane.xlu1 %721  ;;  %v3706_v26 = vpop.xlane.xlu0 %988 }
 0x1bb   : > { %v1185_v63 = vmax.f32 %v1153_v18, 1e-16 }
 0x1be   : > { %v3708_v29 = vpop.xlane.xlu1 %856  ;;  %v842_v36 = vpop.xlane.xlu0 %841 }
 0x1bf   : > { %v1039_v62 = vrot.slane %v842_v36, %v3184_v58 }
 0x1c2   : > { %v3710_v33 = vpop.xlane.xlu1 %952  ;;  %v3712_v48 = vpop.xlane.xlu0 %889 }
 0x1c6   : > { %v3714_v2 = vpop.xlane.xlu1 %901  ;;  %v938_v47 = vpop.xlane.xlu0 %937 }
 0x1c7   : > { %v1152_v60 = vmul.f32 %v1039_v62, %v938_v47  ;;  %v2904_v47 = vpop.eup %2903 }
 0x1c8   : > { %v2906_v53 = vpop.eup %2905  ;;  %v1245_v49 = vmul.f32 %v2904_v47, %v3622_v51 }
 0x1c9   : > { %v1184_v11 = vmax.f32 %v1152_v60, 1e-16  ;;  %v2908_v7 = vpop.eup %2907  ;;  %v1244_v56 = vmul.f32 %v2906_v53, %v3639_v15  ;;  %v4687_v60 = vlaneseq }
 0x1ca   : > { %v3716_v55 = vpop.xlane.xlu1 %997  ;;  %v3718_v52 = vpop.xlane.xlu0 %985  ;;  %v1246_v38 = vmul.f32 %v2908_v7, %v3674_v14 }
 0x1cb   : > { %2911 = vrsqrt.f32 %v1184_v11  ;;  %v2910_v0 = vpop.eup %2909  ;;  %v3762_v1 = vand.u32 127, %v4687_v60  ;;  %v3766_v11 = vmul.f32 10.0, %v1244_v56 }
 0x1cc   : > { %2913 = vrsqrt.f32 %v1185_v63  ;;  %v1247_v59 = vmul.f32 %v2910_v0, %v3662_v10  ;;  %v3768_v15 = vmul.f32 10.0, %v1246_v38  ;;  %v3776_v63 = vmul.f32 10.0, %v1245_v49 }
 0x1cd   : > { %4688 = vst [vmem:[#allocation7_spill] sm:$0xff] %v3762_v1  ;;  %vm1310_vm7 = vcmp.ge.s32.totalorder %v3762_v1, 1  ;;  %vm1311_vm8 = vcmp.le.s32.totalorder %v3762_v1, 3 }
 0x1ce   : > { %v3720_v54 = vpop.xlane.xlu1 %727  ;;  %v713_v22 = vpop.xlane.xlu0 %712  ;;  %vm3822_vm11 = vmand %vm1310_vm7, %vm1311_vm8 }
 0x1d2   : > { %v3726_v41 = vpop.xlane.xlu1 %772  ;;  %v3728_v20 = vpop.xlane.xlu0 %898 }
 0x1d5   : > { %v2912_v39 = vpop.eup %2911 }
 0x1d6   : > { %v3738_v50 = vpop.xlane.xlu1 %862  ;;  %v947_v3 = vpop.xlane.xlu0 %946  ;;  %v1248_v13 = vmul.f32 %v2912_v39, %v713_v22 }
 0x1d7   : > { %v1155_v37 = vmul.f32 %v1051_v46, %v947_v3  ;;  %v2914_v46 = vpop.eup %2913 }
 0x1d8   : > { %v3780_v10 = vmul.f32 10.0, %v1248_v13  ;;  %v1249_v47 = vmul.f32 %v2914_v46, %v3696_v6 }
 0x1d9   : > { %v1187_v27 = vmax.f32 %v1155_v37, 1e-16  ;;  %v4689_v37 = vld [vmem:[#allocation2_spill] sm:$0xff] }
 0x1da   : > { %v3741_v43 = vpop.xlane.xlu1 %910  ;;  %v3743_v25 = vpop.xlane.xlu0 %994 }
 0x1db   : > { %2915 = vrsqrt.f32 %v1187_v27  ;;  %v3778_v27 = vmul.f32 10.0, %v1247_v59 }
 0x1de   : > { %v3746_v44 = vpop.xlane.xlu1 %958  ;;  %v848_v4 = vpop.xlane.xlu0 %847 }
 0x1df   : > { %v1047_v40 = vrot.slane %v848_v4, %v3184_v58  ;;  %v3774_v4 = vsub.s32 %v3762_v1, %v4689_v37  ;;  %v1087_v1 = vrot.slane %v3598_v35, %v3184_v58 }
 0x1e1   : > { %v1349_v22 = vrot.slane %v3766_v11, %v3774_v4  ;;  %v1353_v7 = vrot.slane %v3776_v63, %v3774_v4  ;;  %v1365_v6 = vrot.slane %v3780_v10, %v3774_v4 }
 0x1e2   : > { %v3748_v21 = vpop.xlane.xlu1 %1006  ;;  %v3750_v36 = vpop.xlane.xlu0 %895 }
 0x1e3   : > { %v1475_v56 = vsel %vm1474_vm3, %v1353_v7, %v1349_v22  ;;  %v1091_v7 = vrot.slane %v3588_v12, %v3184_v58 }
 0x1e5   : > { %v2916_v51 = vpop.eup %2915 }
 0x1e6   : > { %v3753_v5 = vpop.xlane.xlu1 %859  ;;  %v944_v19 = vpop.xlane.xlu0 %943  ;;  %v1251_v0 = vmul.f32 %v2916_v51, %v3704_v28 }
 0x1e7   : > { %v1154_v24 = vmul.f32 %v1047_v40, %v944_v19  ;;  %v1357_v40 = vrot.slane %v3768_v15, %v3774_v4 }
 0x1e8   : > { %v3807_v13 = vmul.f32 10.0, %v1251_v0 }
 0x1e9   : > { %v1186_v62 = vmax.f32 %v1154_v24, 1e-16  ;;  %v1361_v24 = vrot.slane %v3778_v27, %v3774_v4  ;;  %v1477_v38 = vsel %vm1476_vm2, %v1357_v40, %v1475_v56  ;;  %v1165_v56 = vmul.f32 %v1091_v7, %v3604_v34 }
 0x1ea   : > { %v3757_v3 = vpop.xlane.xlu1 %907  ;;  %v3759_v30 = vpop.xlane.xlu0 %991  ;;  %4691 = vst [vmem:[#allocation15_spill] sm:$0xff] %v3807_v13  ;;  %v1377_v0 = vrot.slane %v3807_v13, %v3774_v4  ;;  %v1095_v34 = vrot.slane %v3686_v57, %v3184_v58 }
 0x1eb   : > { %2917 = vrsqrt.f32 %v1186_v62  ;;  %v3799_v62 = vmul.f32 10.0, %v1249_v47  ;;  %v1479_v28 = vsel %vm1478_vm4, %v1361_v24, %v1477_v38 }
 0x1ec   : > { %v1481_v46 = vsel %vm1480_vm5, %v1365_v6, %v1479_v28 }
 0x1ed   : > { %4690 = vst [vmem:[#allocation14_spill] sm:$0xff] %v3799_v62 }
 0x1ee   : > { %v3770_v18 = vpop.xlane.xlu1 %955  ;;  %v719_v14 = vpop.xlane.xlu0 %718 }
 0x1f2   : > { %v3787_v53 = vpop.xlane.xlu1 %733  ;;  %v3789_v19 = vpop.xlane.xlu0 %904 }
 0x1f5   : > { %v2918_v39 = vpop.eup %2917 }
 0x1f6   : > { %v1250_v60 = vmul.f32 %v2918_v39, %v719_v14  ;;  %v3802_v49 = vpop.xlane.xlu1 %778  ;;  %v3804_v59 = vpop.xlane.xlu0 %1000  ;;  %v1369_v14 = vrot.slane %v3799_v62, %v3774_v4 }
 0x1f8   : > { %v3810_v51 = vmul.f32 10.0, %v1250_v60  ;;  %v1483_v6 = vsel %vm1482_vm6, %v1369_v14, %v1481_v46  ;;  %v1197_v46 = vmax.f32 %v1165_v56, 1e-16  ;;  %v1164_v14 = vmul.f32 %v1087_v1, %v3614_v61 }
 0x1f9   : > { %v1059_v56 = vrot.slane %v3708_v29, %v3184_v58 }
 0x1fa   : > { %4692 = vst [vmem:[#allocation6_spill] sm:$0xff] %v3810_v51  ;;  %v1373_v22 = vrot.slane %v3810_v51, %v3774_v4  ;;  %v3818_v47 = vpop.xlane.xlu1 %868  ;;  %v854_v40 = vpop.xlane.xlu0 %853  ;;  %2919 = vrsqrt.f32 %v1197_v46  ;;  %v1119_v51 = vrot.slane %v3714_v2, %v3184_v58 }
 0x1fc   : > { %v1485_v39 = vsel %vm1484_vm9, %v1373_v22, %v1483_v6  ;;  %v1196_v6 = vmax.f32 %v1164_v14, 1e-16  ;;  %v1055_v14 = vrot.slane %v854_v40, %v3184_v58 }
 0x1fd   : > { %v1487_v38 = vsel %vm1486_vm10, %v1377_v0, %v1485_v39  ;;  %v1166_v0 = vmul.f32 %v1095_v34, %v3692_v8 }
 0x1fe   : > { %v3832_v60 = vpop.xlane.xlu1 %916  ;;  %v950_v28 = vpop.xlane.xlu0 %949  ;;  %v1513_v12 = vsel %vm3822_vm11, %v1487_v38, -inf  ;;  %2921 = vrsqrt.f32 %v1196_v6 }
 0x1ff   : > { %v1518_v13 = vsel %vm1517_vm12, %v1513_v12, -inf  ;;  %v1198_v38 = vmax.f32 %v1166_v0, 1e-16  ;;  %v1157_v0 = vmul.f32 %v1059_v56, %v3710_v33  ;;  %v1156_v6 = vmul.f32 %v1055_v14, %v950_v28 }
 0x200   : > { %1519 = vmax.xlane.f32.xlu0 %v1518_v13  ;;  %v1099_v13 = vrot.slane %v3664_v32, %v3184_v58  ;;  %v1103_v32 = vrot.slane %v3712_v48, %v3184_v58  ;;  %v1067_v33 = vrot.slane %v3738_v50, %v3184_v58  ;;  %v1172_v48 = vmul.f32 %v1119_v51, %v3716_v55 }
 0x201   : > { %2923 = vrsqrt.f32 %v1198_v38  ;;  %v1189_v40 = vmax.f32 %v1157_v0, 1e-16  ;;  %v1188_v28 = vmax.f32 %v1156_v6, 1e-16  ;;  %v1107_v50 = vrot.slane %v3684_v31, %v3184_v58 }
 0x202   : > { %v3842_v22 = vpop.xlane.xlu1 %964  ;;  %v3844_v7 = vpop.xlane.xlu0 %775  ;;  %v1167_v57 = vmul.f32 %v1099_v13, %v3630_v42  ;;  %v1168_v62 = vmul.f32 %v1103_v32, %v3718_v52  ;;  %v1159_v2 = vmul.f32 %v1067_v33, %v3746_v44  ;;  %v1123_v52 = vrot.slane %v3789_v19, %v3184_v58 }
 0x203   : > { %v1127_v44 = vrot.slane %v3757_v3, %v3184_v58  ;;  %v1169_v19 = vmul.f32 %v1107_v50, %v3706_v26  ;;  %v1204_v32 = vmax.f32 %v1172_v48, 1e-16  ;;  %v1111_v31 = vrot.slane %v3750_v36, %v3184_v58 }
 0x204   : > { %v2920_v46 = vpop.eup %2919  ;;  %v1199_v34 = vmax.f32 %v1167_v57, 1e-16  ;;  %v1200_v55 = vmax.f32 %v1168_v62, 1e-16  ;;  %v1173_v0 = vmul.f32 %v1123_v52, %v3804_v59  ;;  %v1131_v3 = vrot.slane %v3741_v43, %v3184_v58 }
 0x205   : > { %v1261_v38 = vmul.f32 %v2920_v46, %v3628_v23  ;;  %v1063_v23 = vrot.slane %v3753_v5, %v3184_v58  ;;  %v1115_v43 = vrot.slane %v3728_v20, %v3184_v58 }
 0x206   : > { %v3847_v39 = vpop.xlane.xlu1 %1012  ;;  %v3849_v35 = vpop.xlane.xlu0 %724  ;;  %2925 = vrsqrt.f32 %v1199_v34  ;;  %v1205_v33 = vmax.f32 %v1173_v0, 1e-16  ;;  %v1175_v36 = vmul.f32 %v1131_v3, %v3748_v21  ;;  %v1139_v21 = vrot.slane %v3832_v60, %v3184_v58 }
 0x207   : > { %v3876_v46 = vmul.f32 10.0, %v1261_v38  ;;  %v1158_v51 = vmul.f32 %v1063_v23, %v3770_v18  ;;  %2927 = vrsqrt.f32 %v1189_v40  ;;  %v1191_v38 = vmax.f32 %v1159_v2, 1e-16 }
 0x208   : > { %v2922_v29 = vpop.eup %2921  ;;  %2929 = vrsqrt.f32 %v1188_v28  ;;  %v1170_v40 = vmul.f32 %v1111_v31, %v3759_v30  ;;  %v1201_v2 = vmax.f32 %v1169_v19, 1e-16  ;;  %v1207_v50 = vmax.f32 %v1175_v36, 1e-16 }
 0x209   : > { %v1260_v56 = vmul.f32 %v2922_v29, %v3624_v45  ;;  %2931 = vrsqrt.f32 %v1200_v55  ;;  %v1190_v59 = vmax.f32 %v1158_v51, 1e-16  ;;  %v1177_v55 = vmul.f32 %v1139_v21, %v3847_v39 }
 0x20a   : > { %v866_v61 = vpop.xlane.xlu1 %865  ;;  %v1004_v1 = vpop.xlane.xlu0 %1003  ;;  %2933 = vrsqrt.f32 %v1204_v32 }
 0x20b   : > { %v2924_v57 = vpop.eup %2923  ;;  %v1071_v5 = vrot.slane %v866_v61, %v3184_v58  ;;  %v1174_v18 = vmul.f32 %v1127_v44, %v1004_v1  ;;  %v3899_v29 = vmul.f32 10.0, %v1260_v56  ;;  %v1075_v1 = vrot.slane %v3818_v47, %v3184_v58 }
 0x20c   : > { %v1262_v45 = vmul.f32 %v2924_v57, %v3702_v17  ;;  %v3047_v57 = vmov 0   ;;  %2935 = vrsqrt.f32 %v1191_v38  ;;  %v1171_v47 = vmul.f32 %v1115_v43, %v3743_v25 }
 0x20d   : > { %2902 = vset.pattern.permute.xlu1 %v3047_v57  ;;  %2901 = vset.pattern.permute.xlu0 %v3047_v57  ;;  %v1206_v23 = vmax.f32 %v1174_v18, 1e-16  ;;  %2937 = vrsqrt.f32 %v1190_v59  ;;  %v1161_v52 = vmul.f32 %v1075_v1, %v3842_v22  ;;  %v1413_v51 = vrot.slane %v3899_v29, %v3774_v4 }
 0x20e   : > { %v3856_v8 = vpop.xlane.xlu1 %1009  ;;  %v3858_v12 = vpop.xlane.xlu0 %730  ;;  %v3901_v26 = vmul.f32 10.0, %v1262_v45  ;;  %2939 = vrsqrt.f32 %v1205_v33  ;;  %v1417_v44 = vrot.slane %v3876_v46, %v3774_v4  ;;  %v1203_v0 = vmax.f32 %v1171_v47, 1e-16 }
 0x20f   : > { %v1193_v39 = vmax.f32 %v1161_v52, 1e-16 }
 0x210   : > { %v2926_v48 = vpop.eup %2925  ;;  %v1495_v31 = vsel %vm1474_vm3, %v1417_v44, %v1413_v51 }
 0x211   : > { %v1263_v20 = vmul.f32 %v2926_v48, %v3698_v16  ;;  %v1421_v16 = vrot.slane %v3901_v26, %v3774_v4 }
 0x212   : > { %v3865_v42 = vpop.xlane.xlu1 %736  ;;  %v914_v13 = vpop.xlane.xlu0 %913 }
 0x213   : > { %v1135_v62 = vrot.slane %v914_v13, %v3184_v58  ;;  %v3927_v38 = vmul.f32 10.0, %v1263_v20  ;;  %v1496_v33 = vsel %vm1476_vm2, %v1421_v16, %v1495_v31 }
 0x215   : > { %v1176_v28 = vmul.f32 %v1135_v62, %v3856_v8  ;;  %v2928_v8 = vpop.eup %2927 }
 0x216   : > { %v3881_v14 = vpop.xlane.xlu1 %874  ;;  %v962_v34 = vpop.xlane.xlu0 %961  ;;  %v1253_v18 = vmul.f32 %v2928_v8, %v3720_v54  ;;  %v1425_v54 = vrot.slane %v3927_v38, %v3774_v4 }
 0x217   : > { %v1160_v6 = vmul.f32 %v1071_v5, %v962_v34  ;;  %v1202_v34 = vmax.f32 %v1170_v40, 1e-16  ;;  %v1208_v5 = vmax.f32 %v1176_v28, 1e-16  ;;  %v1083_v60 = vrot.slane %v3881_v14, %v3184_v58  ;;  %v2930_v25 = vpop.eup %2929 }
 0x218   : > { %v1209_v14 = vmax.f32 %v1177_v55, 1e-16  ;;  %v1252_v62 = vmul.f32 %v2930_v25, %v3849_v35  ;;  %v3938_v28 = vmul.f32 10.0, %v1253_v18  ;;  %v1497_v47 = vsel %vm1478_vm4, %v1425_v54, %v1496_v33 }
 0x219   : > { %v1192_v13 = vmax.f32 %v1160_v6, 1e-16  ;;  %v2932_v6 = vpop.eup %2931 }
 0x21a   : > { %v971_v61 = vpop.xlane.xlu1 %970  ;;  %v3895_v17 = vpop.xlane.xlu0 %739  ;;  %v1264_v36 = vmul.f32 %v2932_v6, %v3700_v9  ;;  %v1385_v25 = vrot.slane %v3938_v28, %v3774_v4 }
 0x21b   : > { %2941 = vrsqrt.f32 %v1192_v13  ;;  %v1163_v19 = vmul.f32 %v1083_v60, %v971_v61  ;;  %v2934_v40 = vpop.eup %2933 }
 0x21c   : > { %2943 = vrsqrt.f32 %v1206_v23  ;;  %v2936_v57 = vpop.eup %2935  ;;  %v3944_v55 = vmul.f32 10.0, %v1264_v36  ;;  %v1268_v8 = vmul.f32 %v2934_v40, %v3726_v41 }
 0x21d   : > { %2945 = vrsqrt.f32 %v1201_v2  ;;  %v1195_v1 = vmax.f32 %v1163_v19, 1e-16  ;;  %v2938_v48 = vpop.eup %2937  ;;  %v1255_v60 = vmul.f32 %v2936_v57, %v3787_v53 }
 0x21e   : > { %v3910_v30 = vpop.xlane.xlu1 %784  ;;  %v923_v56 = vpop.xlane.xlu0 %922  ;;  %2947 = vrsqrt.f32 %v1202_v34  ;;  %v1254_v2 = vmul.f32 %v2938_v48, %v3858_v12  ;;  %v1429_v18 = vrot.slane %v3944_v55, %v3774_v4 }
 0x21f   : > { %v1147_v32 = vrot.slane %v923_v56, %v3184_v58  ;;  %2949 = vrsqrt.f32 %v1207_v50  ;;  %v2940_v23 = vpop.eup %2939  ;;  %v3940_v56 = vmul.f32 10.0, %v1252_v62 }
 0x220   : > { %2951 = vrsqrt.f32 %v1208_v5  ;;  %v3953_v16 = vmul.f32 10.0, %v1254_v2 }
 0x221   : > { %2953 = vrsqrt.f32 %v1193_v39  ;;  %v1381_v44 = vrot.slane %v3940_v56, %v3774_v4 }
 0x222   : > { %v920_v22 = vpop.xlane.xlu1 %919  ;;  %v1019_v45 = vpop.xlane.xlu0 %1018  ;;  %2955 = vrsqrt.f32 %v1203_v0 }
 0x223   : > { %v1179_v13 = vmul.f32 %v1147_v32, %v1019_v45  ;;  %2957 = vrsqrt.f32 %v1209_v14  ;;  %v1143_v35 = vrot.slane %v920_v22, %v3184_v58  ;;  %v1269_v22 = vmul.f32 %v2940_v23, %v3844_v7 }
 0x224   : > { %2959 = vrsqrt.f32 %v1195_v1  ;;  %v3957_v14 = vmul.f32 10.0, %v1268_v8  ;;  %v1488_v33 = vsel %vm1474_vm3, %v1385_v25, %v1381_v44 }
 0x225   : > { %v2942_v52 = vpop.eup %2941  ;;  %v1211_v51 = vmax.f32 %v1179_v13, 1e-16 }
 0x226   : > { %v968_v3 = vpop.xlane.xlu1 %967  ;;  %v872_v59 = vpop.xlane.xlu0 %871  ;;  %v1256_v41 = vmul.f32 %v2942_v52, %v3865_v42  ;;  %v3963_v42 = vmul.f32 10.0, %v1269_v22 }
 0x227   : > { %v1079_v61 = vrot.slane %v872_v59, %v3184_v58  ;;  %v2944_v50 = vpop.eup %2943 }
 0x228   : > { %v2946_v5 = vpop.eup %2945  ;;  %v1270_v53 = vmul.f32 %v2944_v50, %v3802_v49  ;;  %v3972_v57 = vmul.f32 10.0, %v1256_v41 }
 0x229   : > { %v1162_v43 = vmul.f32 %v1079_v61, %v968_v3  ;;  %v2948_v45 = vpop.eup %2947  ;;  %v3961_v3 = vmul.f32 10.0, %v1255_v60  ;;  %v1389_v61 = vrot.slane %v3953_v16, %v3774_v4 }
 0x22a   : > { %v1016_v21 = vpop.xlane.xlu1 %1015  ;;  %v782_v9 = vpop.xlane.xlu0 %781  ;;  %v3975_v54 = vmul.f32 10.0, %v1270_v53  ;;  %v1397_v22 = vrot.slane %v3972_v57, %v3774_v4 }
 0x22b   : > { %v1194_v34 = vmax.f32 %v1162_v43, 1e-16  ;;  %v1178_v20 = vmul.f32 %v1143_v35, %v1016_v21  ;;  %v2950_v19 = vpop.eup %2949  ;;  %v1393_v8 = vrot.slane %v3961_v3, %v3774_v4 }
 0x22c   : > { %v2952_v6 = vpop.eup %2951  ;;  %v1271_v31 = vmul.f32 %v2950_v19, %v782_v9  ;;  %v1498_v9 = vsel %vm1480_vm5, %v1429_v18, %v1497_v47  ;;  %v1453_v25 = vrot.slane %v3975_v54, %v3774_v4 }
 0x22d   : > { %2961 = vrsqrt.f32 %v1194_v34  ;;  %v1210_v12 = vmax.f32 %v1178_v20, 1e-16  ;;  %v2954_v62 = vpop.eup %2953  ;;  %v1272_v35 = vmul.f32 %v2952_v6, %v3910_v30  ;;  %v1449_v34 = vrot.slane %v3963_v42, %v3774_v4 }
 0x22e   : > { %v767_v39 = vpop.xlane.xlu1 %766  ;;  %v764_v0 = vpop.xlane.xlu0 %763  ;;  %v1257_v36 = vmul.f32 %v2954_v62, %v3895_v17  ;;  %v3980_v2 = vmul.f32 10.0, %v1271_v31  ;;  %v1445_v17 = vrot.slane %v3957_v14, %v3774_v4 }
 0x22f   : > { %2963 = vrsqrt.f32 %v1210_v12  ;;  %v1266_v7 = vmul.f32 %v2948_v45, %v767_v39  ;;  %v1265_v32 = vmul.f32 %v2946_v5, %v764_v0  ;;  %v2956_v49 = vpop.eup %2955  ;;  %v3999_v45 = vmul.f32 10.0, %v1272_v35 }
 0x230   : > { %2965 = vrsqrt.f32 %v1211_v51  ;;  %v2958_v48 = vpop.eup %2957  ;;  %v1489_v51 = vsel %vm1476_vm2, %v1389_v61, %v1488_v33  ;;  %v3995_v5 = vmul.f32 10.0, %v1257_v36  ;;  %v1457_v39 = vrot.slane %v3980_v2, %v3774_v4 }
 0x231   : > { %v3965_v59 = vmul.f32 10.0, %v1266_v7  ;;  %v3967_v40 = vmul.f32 10.0, %v1265_v32  ;;  %v2960_v50 = vpop.eup %2959  ;;  %v1502_v32 = vsel %vm1474_vm3, %v1449_v34, %v1445_v17  ;;  %v1490_v6 = vsel %vm1478_vm4, %v1393_v8, %v1489_v51 }
 0x232   : > { %v770_v1 = vpop.xlane.xlu1 %769  ;;  %v788_v13 = vpop.xlane.xlu0 %787 }
 0x233   : > { %v1433_v43 = vrot.slane %v3967_v40, %v3774_v4  ;;  %v1267_v23 = vmul.f32 %v2956_v49, %v770_v1  ;;  %v1437_v21 = vrot.slane %v3965_v59, %v3774_v4  ;;  %v1273_v52 = vmul.f32 %v2958_v48, %v788_v13 }
 0x234   : > { %v1401_v49 = vrot.slane %v3995_v5, %v3774_v4  ;;  %v1491_v13 = vsel %vm1480_vm5, %v1397_v22, %v1490_v6  ;;  %v1503_v48 = vsel %vm1476_vm2, %v1453_v25, %v1502_v32  ;;  %v4055_v32 = vsub.s32 1, %v4689_v37 }
 0x235   : > { %v1499_v30 = vsel %vm1482_vm6, %v1433_v43, %v1498_v9  ;;  %v3990_v20 = vmul.f32 10.0, %v1267_v23  ;;  %v4007_v0 = vmul.f32 10.0, %v1273_v52  ;;  %v1504_v9 = vsel %vm1478_vm4, %v1457_v39, %v1503_v48 }
 0x236   : > { %v743_v47 = vpop.xlane.xlu1 %742  ;;  %v746_v60 = vpop.xlane.xlu0 %745  ;;  %v1500_v53 = vsel %vm1484_vm9, %v1437_v21, %v1499_v30  ;;  %v1461_v21 = vrot.slane %v3999_v45, %v3774_v4  ;;  %v1492_v8 = vsel %vm1482_vm6, %v1401_v49, %v1491_v13  ;;  %v4058_v6 = vsub.s32 2, %v4689_v37 }
 0x237   : > { %v2962_v12 = vpop.eup %2961  ;;  %v1441_v44 = vrot.slane %v3990_v20, %v3774_v4  ;;  %v1259_v41 = vmul.f32 %v2960_v50, %v746_v60  ;;  %v1465_v52 = vrot.slane %v4007_v0, %v3774_v4 }
 0x238   : > { %v1258_v19 = vmul.f32 %v2962_v12, %v743_v47  ;;  %v1505_v47 = vsel %vm1480_vm5, %v1461_v21, %v1504_v9 }
 0x239   : > { %v2964_v7 = vpop.eup %2963  ;;  %v4012_v31 = vmul.f32 10.0, %v1259_v41  ;;  %v1501_v18 = vsel %vm1486_vm10, %v1441_v44, %v1500_v53  ;;  %v1506_v25 = vsel %vm1482_vm6, %v1465_v52, %v1505_v47 }
 0x23a   : > { %v2966_v62 = vpop.eup %2965  ;;  %v4017_v33 = vmul.f32 10.0, %v1258_v19  ;;  %v794_v61 = vpop.xlane.xlu1 %793  ;;  %v1515_v1 = vsel %vm3822_vm11, %v1501_v18, -inf  ;;  %v4061_v18 = vsub.s32 4, %v4689_v37 }
 0x23b   : > { %v791_v36 = vpop.xlane.xlu0 %790  ;;  %v1275_v35 = vmul.f32 %v2966_v62, %v794_v61  ;;  %v1524_v23 = vsel %vm1517_vm12, %v1515_v1, -inf  ;;  %v1409_v34 = vrot.slane %v4012_v31, %v3774_v4  ;;  %v4064_v62 = vsub.s32 3, %v4689_v37 }
 0x23c   : > { %v1274_v43 = vmul.f32 %v2964_v7, %v791_v36  ;;  %v1405_v17 = vrot.slane %v4017_v33, %v3774_v4  ;;  %1525 = vmax.xlane.f32.xlu0 %v1524_v23 }
 0x23d   : > { %v4033_v30 = vmul.f32 10.0, %v1275_v35 }
 0x23e   : > { %v4035_v50 = vmul.f32 10.0, %v1274_v43  ;;  %v1493_v51 = vsel %vm1484_vm9, %v1405_v17, %v1492_v8 }
 0x23f   : > { %v1473_v60 = vrot.slane %v4033_v30, %v3774_v4  ;;  %v1494_v12 = vsel %vm1486_vm10, %v1409_v34, %v1493_v51 }
 0x240   : > { %v1469_v22 = vrot.slane %v4035_v50, %v3774_v4  ;;  %v1514_v44 = vsel %vm3822_vm11, %v1494_v12, -inf }
 0x241   : > { %v1521_v41 = vsel %vm1517_vm12, %v1514_v44, -inf }
 0x242   : > { %v1507_v39 = vsel %vm1484_vm9, %v1469_v22, %v1506_v25  ;;  %1522 = vmax.xlane.f32.xlu1 %v1521_v41  ;;  %v4113_v41 = vsub.s32 7, %v4689_v37 }
 0x243   : > { %v1508_v19 = vsel %vm1486_vm10, %v1473_v60, %v1507_v39  ;;  %v4102_v60 = vsub.s32 6, %v4689_v37 }
 0x244   : > { %v1516_v53 = vsel %vm3822_vm11, %v1508_v19, -inf }
 0x245   : > { %v1527_v7 = vsel %vm1517_vm12, %v1516_v53, -inf }
 0x246   : > { %1528 = vmax.xlane.f32.xlu1 %v1527_v7 }
 0x28d   : > { %v4066_v49 = vpop.xlane.xlu0 %1519 }
 0x28e   : > { %v1537_v61 = vrot.slane %v4066_v49, %v3184_v58  ;;  %v1541_v36 = vrot.slane %v4066_v49, %v4055_v32  ;;  %v1545_v1 = vrot.slane %v4066_v49, %v4058_v6  ;;  %v1553_v13 = vrot.slane %v4066_v49, %v4061_v18 }
 0x28f   : > { %v1549_v43 = vrot.slane %v4066_v49, %v4064_v62 }
 0x290   : > { %v4077_v48 = vsub.f32 %v3766_v11, %v1537_v61  ;;  %v4080_v35 = vsub.f32 %v3776_v63, %v1541_v36  ;;  %v4085_v23 = vsub.f32 %v3768_v15, %v1545_v1  ;;  %v4088_v21 = vsub.f32 %v3780_v10, %v1553_v13 }
 0x291   : > { %v4094_v17 = vsub.f32 %v3778_v27, %v1549_v43  ;;  %v4099_v27 = vsub.s32 5, %v4689_v37  ;;  %v4695_v43 = vld [vmem:[#allocation14_spill] sm:$0xff] }
 0x292   : > { %v1726_v9 = vmul.f32 1.442695, %v4077_v48  ;;  %v1728_v52 = vmul.f32 1.442695, %v4080_v35  ;;  %v1734_v11 = vmul.f32 1.442695, %v4088_v21 }
 0x293   : > { %v1730_v63 = vmul.f32 1.442695, %v4085_v23  ;;  %v1732_v15 = vmul.f32 1.442695, %v4094_v17  ;;  %v1557_v19 = vrot.slane %v4066_v49, %v4099_v27 }
 0x294   : > { %2967 = vpow2.f32 %v1726_v9 }
 0x295   : > { %2969 = vpow2.f32 %v1728_v52  ;;  %v4136_v9 = vsub.f32 %v4695_v43, %v1557_v19  ;;  %v1565_v19 = vrot.slane %v4066_v49, %v4113_v41 }
 0x296   : > { %2971 = vpow2.f32 %v1734_v11  ;;  %v1561_v11 = vrot.slane %v4066_v49, %v4102_v60 }
 0x297   : > { %2973 = vpow2.f32 %v1730_v63  ;;  %v1736_v63 = vmul.f32 1.442695, %v4136_v9 }
 0x298   : > { %2975 = vpow2.f32 %v1732_v15 }
 0x29e   : > { %v2968_v10 = vpop.eup %2967 }
 0x29f   : > { %v2970_v34 = vpop.eup %2969  ;;  %1823 = vperm.xlu0 %2901, %v2968_v10  }
 0x2a0   : > { %1826 = vperm.xlu1 %2902, %v2970_v34   ;;  %v2972_v8 = vpop.eup %2971 }
 0x2a1   : > { %v2974_v51 = vpop.eup %2973 }
 0x2a2   : > { %v2976_v47 = vpop.eup %2975 }
 0x2a3   : > { %1835 = vperm.xlu0 %2901, %v2972_v8   ;;  %v4696_v8 = vld [vmem:[#allocation6_spill] sm:$0xff] }
 0x2a4   : > { %1829 = vperm.xlu1 %2902, %v2974_v51  }
 0x2a8   : > { %1832 = vperm.xlu1 %2902, %v2976_v47  }
 0x2c9   : > { %v4104_v22 = vpop.xlane.xlu0 %1525 }
 0x2ca   : > { %v1601_v12 = vrot.slane %v4104_v22, %v3184_v58  ;;  %v1605_v25 = vrot.slane %v4104_v22, %v4055_v32  ;;  %v1609_v44 = vrot.slane %v4104_v22, %v4058_v6  ;;  %v1625_v39 = vrot.slane %v4104_v22, %v4102_v60 }
 0x2cb   : > { %v1629_v36 = vrot.slane %v4104_v22, %v4113_v41  ;;  %v1617_v51 = vrot.slane %v4104_v22, %v4061_v18 }
 0x2cc   : > { %v4120_v53 = vsub.f32 %v3899_v29, %v1601_v12  ;;  %v4123_v7 = vsub.f32 %v3876_v46, %v1605_v25  ;;  %v4126_v61 = vsub.f32 %v3901_v26, %v1609_v44  ;;  %v4131_v37 = vsub.f32 %v3965_v59, %v1625_v39 }
 0x2cd   : > { %v1613_v46 = vrot.slane %v4104_v22, %v4064_v62  ;;  %v4144_v52 = vsub.f32 %v3990_v20, %v1629_v36  ;;  %v4157_v20 = vsub.f32 %v4696_v8, %v1561_v11 }
 0x2ce   : > { %v1758_v1 = vmul.f32 1.442695, %v4120_v53  ;;  %v1762_v13 = vmul.f32 1.442695, %v4126_v61  ;;  %v1760_v29 = vmul.f32 1.442695, %v4123_v7 }
 0x2cf   : > { %v4141_v26 = vpop.xlane.xlu1 %1522  ;;  %v1770_v59 = vmul.f32 1.442695, %v4131_v37  ;;  %v4151_v15 = vsub.f32 %v3927_v38, %v1613_v46  ;;  %v1772_v10 = vmul.f32 1.442695, %v4144_v52  ;;  %v1738_v36 = vmul.f32 1.442695, %v4157_v20 }
 0x2d0   : > { %2977 = vpow2.f32 %v1758_v1  ;;  %v1585_v12 = vrot.slane %v4141_v26, %v4061_v18  ;;  %v4173_v1 = vsub.f32 %v3944_v55, %v1617_v51  ;;  %v1621_v55 = vrot.slane %v4104_v22, %v4099_v27 }
 0x2d1   : > { %2979 = vpow2.f32 %v1762_v13  ;;  %v1764_v47 = vmul.f32 1.442695, %v4151_v15  ;;  %v1569_v22 = vrot.slane %v4141_v26, %v3184_v58 }
 0x2d2   : > { %2981 = vpow2.f32 %v1760_v29  ;;  %v4176_v13 = vsub.f32 %v3972_v57, %v1585_v12  ;;  %v1766_v11 = vmul.f32 1.442695, %v4173_v1  ;;  %v1589_v57 = vrot.slane %v4141_v26, %v4099_v27 }
 0x2d3   : > { %2983 = vpow2.f32 %v1770_v59  ;;  %v4154_v34 = vpop.xlane.xlu1 %1528  ;;  %v4697_v59 = vld [vmem:[#allocation15_spill] sm:$0xff]  ;;  %v4195_v12 = vsub.f32 %v3967_v40, %v1621_v55 }
 0x2d4   : > { %2985 = vpow2.f32 %v1736_v63  ;;  %v1637_v38 = vrot.slane %v4154_v34, %v4055_v32  ;;  %v1641_v43 = vrot.slane %v4154_v34, %v4058_v6  ;;  %v4182_v49 = vsub.f32 %v4697_v59, %v1565_v19 }
 0x2d5   : > { %2987 = vpow2.f32 %v1772_v10  ;;  %v1750_v63 = vmul.f32 1.442695, %v4176_v13  ;;  %v1768_v40 = vmul.f32 1.442695, %v4195_v12  ;;  %v1573_v19 = vrot.slane %v4141_v26, %v4055_v32 }
 0x2d6   : > { %v4167_v44 = vsub.f32 %v3963_v42, %v1637_v38  ;;  %2989 = vpow2.f32 %v1764_v47  ;;  %v4191_v10 = vsub.f32 %v3975_v54, %v1641_v43  ;;  %v1740_v47 = vmul.f32 1.442695, %v4182_v49 }
 0x2d7   : > { %2991 = vpow2.f32 %v1738_v36  ;;  %v4200_v38 = vsub.f32 %v3995_v5, %v1589_v57  ;;  %v1645_v54 = vrot.slane %v4154_v34, %v4064_v62  ;;  %v4209_v36 = vsub.f32 %v3940_v56, %v1569_v22 }
 0x2d8   : > { %v1776_v46 = vmul.f32 1.442695, %v4167_v44  ;;  %v1593_v5 = vrot.slane %v4141_v26, %v4102_v60  ;;  %v1577_v59 = vrot.slane %v4141_v26, %v4058_v6  ;;  %v4220_v55 = vsub.f32 %v3938_v28, %v1573_v19 }
 0x2d9   : > { %v1752_v43 = vmul.f32 1.442695, %v4200_v38  ;;  %v1742_v56 = vmul.f32 1.442695, %v4209_v36  ;;  %v1661_v22 = vrot.slane %v4154_v34, %v4113_v41  ;;  %v1633_v19 = vrot.slane %v4154_v34, %v3184_v58 }
 0x2da   : > { %v2978_v25 = vpop.eup %2977  ;;  %2993 = vpow2.f32 %v1776_v46  ;;  %v4232_v28 = vsub.f32 %v3953_v16, %v1577_v59 }
 0x2db   : > { %1871 = vperm.xlu1 %2902, %v2978_v25   ;;  %v2980_v39 = vpop.eup %2979  ;;  %2995 = vpow2.f32 %v1766_v11  ;;  %v1778_v25 = vmul.f32 1.442695, %v4191_v10  ;;  %v4224_v11 = vsub.f32 %v4017_v33, %v1593_v5  ;;  %v4248_v5 = vsub.f32 %v4033_v30, %v1661_v22 }
 0x2dc   : > { %1877 = vperm.xlu0 %2901, %v2980_v39   ;;  %v2982_v42 = vpop.eup %2981  ;;  %2997 = vpow2.f32 %v1750_v63  ;;  %v1746_v16 = vmul.f32 1.442695, %v4232_v28  ;;  %v4255_v59 = vsub.f32 %v3957_v14, %v1633_v19 }
 0x2dd   : > { %v2984_v29 = vpop.eup %2983  ;;  %2999 = vpow2.f32 %v1740_v47  ;;  %4698 = vst [vmem:[#allocation11_spill] sm:$0xff] %v4224_v11  ;;  %v1744_v47 = vmul.f32 1.442695, %v4220_v55  ;;  %v1754_v33 = vmul.f32 1.442695, %v4224_v11  ;;  %4700 = vst [vmem:[#allocation17_spill] sm:$0xff] %v4248_v5 }
 0x2de   : > { %v2986_v8 = vpop.eup %2985  ;;  %3001 = vpow2.f32 %v1778_v25 }
 0x2df   : > { %1874 = vperm.xlu1 %2902, %v2982_v42   ;;  %v2988_v51 = vpop.eup %2987  ;;  %v4215_v42 = vsub.f32 %v3980_v2, %v1645_v54  ;;  %3003 = vpow2.f32 %v1768_v40  ;;  %v1649_v2 = vrot.slane %v4154_v34, %v4061_v18 }
 0x2e0   : > { %1889 = vperm.xlu0 %2901, %v2984_v29   ;;  %v2990_v39 = vpop.eup %2989  ;;  %3005 = vpow2.f32 %v1752_v43 }
 0x2e1   : > { %v2992_v46 = vpop.eup %2991  ;;  %v1780_v57 = vmul.f32 1.442695, %v4215_v42  ;;  %3007 = vpow2.f32 %v1742_v56  ;;  %v4239_v54 = vsub.f32 %v3999_v45, %v1649_v2  ;;  %v1788_v56 = vmul.f32 1.442695, %v4248_v5 }
 0x2e3   : > { %1838 = vperm.xlu1 %2902, %v2986_v8   ;;  %4699 = vst [vmem:[#allocation10_spill] sm:$0xff] %v4239_v54  ;;  %3009 = vpow2.f32 %v1780_v57  ;;  %v1782_v45 = vmul.f32 1.442695, %v4239_v54 }
 0x2e4   : > { %1892 = vperm.xlu0 %2901, %v2988_v51   ;;  %v2994_v29 = vpop.eup %2993  ;;  %v1581_v51 = vrot.slane %v4141_v26, %v4064_v62  ;;  %3011 = vpow2.f32 %v1744_v47  ;;  %v1657_v47 = vrot.slane %v4154_v34, %v4102_v60 }
 0x2e5   : > { %v2996_v63 = vpop.eup %2995  ;;  %3013 = vpow2.f32 %v1754_v33 }
 0x2e6   : > { %v2998_v8 = vpop.eup %2997  ;;  %v4242_v40 = vsub.f32 %v3961_v3, %v1581_v51  ;;  %v1597_v3 = vrot.slane %v4141_v26, %v4113_v41  ;;  %3015 = vpow2.f32 %v1746_v16  ;;  %v1653_v26 = vrot.slane %v4154_v34, %v4099_v27 }
 0x2e7   : > { %1880 = vperm.xlu1 %2902, %v2990_v39   ;;  %v3000_v25 = vpop.eup %2999  ;;  %3017 = vpow2.f32 %v1782_v45 }
 0x2e8   : > { %1898 = vperm.xlu0 %2901, %v2994_v29   ;;  %v3002_v39 = vpop.eup %3001  ;;  %v1748_v29 = vmul.f32 1.442695, %v4242_v40  ;;  %v4259_v57 = vsub.f32 %v4012_v31, %v1597_v3  ;;  %v4268_v33 = vsub.f32 %v4007_v0, %v1653_v26 }
 0x2e9   : > { %v3004_v43 = vpop.eup %3003 }
 0x2ea   : > { %3019 = vpow2.f32 %v1748_v29  ;;  %v1756_v51 = vmul.f32 1.442695, %v4259_v57 }
 0x2eb   : > { %1841 = vperm.xlu1 %2902, %v2992_v46   ;;  %v3006_v46 = vpop.eup %3005  ;;  %3021 = vpow2.f32 %v1788_v56 }
 0x2ec   : > { %1859 = vperm.xlu0 %2901, %v2998_v8   ;;  %v3008_v30 = vpop.eup %3007 }
 0x2ed   : > { %v3010_v2 = vpop.eup %3009 }
 0x2ee   : > { %v3012_v14 = vpop.eup %3011 }
 0x2ef   : > { %1883 = vperm.xlu1 %2902, %v2996_v63   ;;  %v1774_v63 = vmul.f32 1.442695, %v4255_v59  ;;  %v3014_v8 = vpop.eup %3013 }
 0x2f0   : > { %1901 = vperm.xlu0 %2901, %v3002_v39   ;;  %v3016_v31 = vpop.eup %3015  ;;  %v1784_v39 = vmul.f32 1.442695, %v4268_v33 }
 0x2f1   : > { %3023 = vpow2.f32 %v1774_v63  ;;  %v3018_v22 = vpop.eup %3017 }
 0x2f2   : > { %3025 = vpow2.f32 %v1756_v51 }
 0x2f3   : > { %1844 = vperm.xlu1 %2902, %v3000_v25   ;;  %v4271_v25 = vsub.f32 %v4035_v50, %v1657_v47  ;;  %3027 = vpow2.f32 %v1784_v39 }
 0x2f4   : > { %1862 = vperm.xlu0 %2901, %v3006_v46   ;;  %v3020_v16 = vpop.eup %3019 }
 0x2f5   : > { %4701 = vst [vmem:[#allocation16_spill] sm:$0xff] %v4271_v25  ;;  %v3022_v19 = vpop.eup %3021  ;;  %v1786_v34 = vmul.f32 1.442695, %v4271_v25 }
 0x2f7   : > { %1886 = vperm.xlu1 %2902, %v3004_v43   ;;  %3029 = vpow2.f32 %v1786_v34 }
 0x2f8   : > { %1904 = vperm.xlu0 %2901, %v3010_v2  }
 0x2fb   : > { %1847 = vperm.xlu1 %2902, %v3008_v30   ;;  %v3024_v0 = vpop.eup %3023 }
 0x2fc   : > { %1865 = vperm.xlu0 %2901, %v3014_v8   ;;  %v3026_v45 = vpop.eup %3025 }
 0x2fd   : > { %v3028_v43 = vpop.eup %3027 }
 0x2ff   : > { %1850 = vperm.xlu1 %2902, %v3012_v14  }
 0x300   : > { %1907 = vperm.xlu0 %2901, %v3018_v22  }
 0x301   : > { %v3030_v46 = vpop.eup %3029 }
 0x303   : > { %1853 = vperm.xlu1 %2902, %v3016_v31  }
 0x304   : > { %1916 = vperm.xlu0 %2901, %v3022_v19  }
 0x307   : > { %1856 = vperm.xlu1 %2902, %v3020_v16  }
 0x30b   : > { %1895 = vperm.xlu1 %2902, %v3024_v0  }
 0x30f   : > { %1868 = vperm.xlu1 %2902, %v3026_v45  }
 0x313   : > { %1910 = vperm.xlu1 %2902, %v3028_v43  }
 0x317   : > { %1913 = vperm.xlu1 %2902, %v3030_v46  }
 0x31e   : > { %v1824_v29 = vpop.permute.xlu0 %1823 }
 0x31f   : > { %v1827_v50 = vpop.permute.xlu1 %1826  ;;  %v1921_v22 = vrot.slane %v1824_v29, %v3774_v4 }
 0x320   : > { %v1925_v31 = vrot.slane %v1827_v50, %v3774_v4 }
 0x322   : > { %v1836_v30 = vpop.permute.xlu0 %1835  ;;  %v2046_v0 = vsel %vm1474_vm3, %v1925_v31, %v1921_v22  ;;  %v4702_v31 = vld [vmem:[#allocation7_spill] sm:$0xff] }
 0x323   : > { %v1830_v3 = vpop.permute.xlu1 %1829  ;;  %v1937_v29 = vrot.slane %v1836_v30, %v3774_v4  ;;  %vm1313_vm13 = vcmp.ge.s32.totalorder %v4702_v31, 4 }
 0x324   : > { %v1929_v39 = vrot.slane %v1830_v3, %v3774_v4 }
 0x326   : > { %v2047_v45 = vsel %vm1476_vm2, %v1929_v39, %v2046_v0 }
 0x327   : > { %v1833_v56 = vpop.permute.xlu1 %1832 }
 0x328   : > { %v1933_v19 = vrot.slane %v1833_v56, %v3774_v4 }
 0x32a   : > { %v2048_v46 = vsel %vm1478_vm4, %v1933_v19, %v2047_v45 }
 0x32b   : > { %v2049_v25 = vsel %vm1480_vm5, %v1937_v29, %v2048_v46 }
 0x35a   : > { %v1872_v2 = vpop.permute.xlu1 %1871 }
 0x35b   : > { %v1878_v26 = vpop.permute.xlu0 %1877  ;;  %v1985_v54 = vrot.slane %v1872_v2, %v3774_v4 }
 0x35c   : > { %v1993_v30 = vrot.slane %v1878_v26, %v3774_v4 }
 0x35e   : > { %v1875_v63 = vpop.permute.xlu1 %1874 }
 0x35f   : > { %v1890_v14 = vpop.permute.xlu0 %1889  ;;  %v1989_v5 = vrot.slane %v1875_v63, %v3774_v4 }
 0x360   : > { %v2009_v46 = vrot.slane %v1890_v14, %v3774_v4 }
 0x361   : > { %v2060_v22 = vsel %vm1474_vm3, %v1989_v5, %v1985_v54 }
 0x362   : > { %v1839_v8 = vpop.permute.xlu1 %1838  ;;  %v2061_v0 = vsel %vm1476_vm2, %v1993_v30, %v2060_v22 }
 0x363   : > { %v1893_v51 = vpop.permute.xlu0 %1892  ;;  %v1941_v50 = vrot.slane %v1839_v8, %v3774_v4 }
 0x364   : > { %v2013_v29 = vrot.slane %v1893_v51, %v3774_v4 }
 0x365   : > { %v2050_v39 = vsel %vm1482_vm6, %v1941_v50, %v2049_v25 }
 0x366   : > { %v1881_v47 = vpop.permute.xlu1 %1880 }
 0x367   : > { %v4279_v34 = vpop.permute.xlu0 %1898  ;;  %v1997_v63 = vrot.slane %v1881_v47, %v3774_v4 }
 0x369   : > { %v2062_v25 = vsel %vm1478_vm4, %v1997_v63, %v2061_v0 }
 0x36a   : > { %v1842_v16 = vpop.permute.xlu1 %1841 }
 0x36b   : > { %v1945_v3 = vrot.slane %v1842_v16, %v3774_v4  ;;  %v1860_v56 = vpop.permute.xlu0 %1859 }
 0x36d   : > { %v2051_v16 = vsel %vm1484_vm9, %v1945_v3, %v2050_v39 }
 0x36e   : > { %v1884_v43 = vpop.permute.xlu1 %1883 }
 0x36f   : > { %v2001_v2 = vrot.slane %v1884_v43, %v3774_v4 }
 0x371   : > { %v2063_v50 = vsel %vm1480_vm5, %v2001_v2, %v2062_v25 }
 0x372   : > { %v1845_v11 = vpop.permute.xlu1 %1844 }
 0x373   : > { %v1949_v8 = vrot.slane %v1845_v11, %v3774_v4  ;;  %v1902_v11 = vpop.permute.xlu0 %1901 }
 0x375   : > { %v2052_v19 = vsel %vm1486_vm10, %v1949_v8, %v2051_v16 }
 0x376   : > { %v1887_v45 = vpop.permute.xlu1 %1886  ;;  %v2082_v54 = vsel %vm1313_vm13, %v2052_v19, 0.0  ;;  %v2078_v5 = vsel %vm3822_vm11, %v2052_v19, 0.0 }
 0x377   : > { %v2005_v26 = vrot.slane %v1887_v45, %v3774_v4  ;;  %v2098_v47 = vsel %vm1517_vm12, %v2082_v54, 0.0  ;;  %v2086_v43 = vsel %vm1517_vm12, %v2078_v5, 0.0  ;;  %v1863_v14 = vpop.permute.xlu0 %1862 }
 0x378   : > { %2099 = vadd.xlane.f32.xlu0 %v2098_v47  ;;  %2087 = vadd.xlane.f32.xlu1 %v2086_v43  ;;  %v1969_v43 = vrot.slane %v1860_v56, %v3774_v4 }
 0x379   : > { %v2064_v3 = vsel %vm1482_vm6, %v2005_v26, %v2063_v50 }
 0x37a   : > { %v1848_v22 = vpop.permute.xlu1 %1847  ;;  %v2065_v39 = vsel %vm1484_vm9, %v2009_v46, %v2064_v3 }
 0x37b   : > { %v2066_v63 = vsel %vm1486_vm10, %v2013_v29, %v2065_v39  ;;  %v1905_v0 = vpop.permute.xlu0 %1904  ;;  %v1953_v5 = vrot.slane %v1848_v22, %v3774_v4  ;;  %v2021_v22 = vrot.slane %v4279_v34, %v3774_v4 }
 0x37c   : > { %v2084_v8 = vsel %vm1313_vm13, %v2066_v63, 0.0  ;;  %v2080_v30 = vsel %vm3822_vm11, %v2066_v63, 0.0  ;;  %v1973_v63 = vrot.slane %v1863_v14, %v3774_v4  ;;  %v2029_v34 = vrot.slane %v1905_v0, %v3774_v4 }
 0x37d   : > { %v2104_v16 = vsel %vm1517_vm12, %v2084_v8, 0.0  ;;  %v2092_v2 = vsel %vm1517_vm12, %v2080_v30, 0.0 }
 0x37e   : > { %v1851_v19 = vpop.permute.xlu1 %1850  ;;  %2105 = vadd.xlane.f32.xlu1 %v2104_v16  ;;  %2093 = vadd.xlane.f32.xlu0 %v2092_v2 }
 0x37f   : > { %v1957_v45 = vrot.slane %v1851_v19, %v3774_v4  ;;  %v1866_v50 = vpop.permute.xlu0 %1865  ;;  %v2025_v19 = vrot.slane %v1902_v11, %v3774_v4 }
 0x380   : > { %v1977_v16 = vrot.slane %v1866_v50, %v3774_v4 }
 0x381   : > { %v2053_v26 = vsel %vm1474_vm3, %v1957_v45, %v1953_v5 }
 0x382   : > { %v1854_v51 = vpop.permute.xlu1 %1853 }
 0x383   : > { %v1961_v54 = vrot.slane %v1854_v51, %v3774_v4  ;;  %v1908_v51 = vpop.permute.xlu0 %1907 }
 0x385   : > { %v2054_v46 = vsel %vm1476_vm2, %v1961_v54, %v2053_v26 }
 0x386   : > { %v1857_v25 = vpop.permute.xlu1 %1856 }
 0x387   : > { %v1965_v47 = vrot.slane %v1857_v25, %v3774_v4  ;;  %v1917_v0 = vpop.permute.xlu0 %1916 }
 0x389   : > { %v2055_v29 = vsel %vm1478_vm4, %v1965_v47, %v2054_v46 }
 0x38a   : > { %v2056_v3 = vsel %vm1480_vm5, %v1969_v43, %v2055_v29  ;;  %v1896_v39 = vpop.permute.xlu1 %1895  ;;  %v2033_v29 = vrot.slane %v1908_v51, %v3774_v4 }
 0x38b   : > { %v2017_v8 = vrot.slane %v1896_v39, %v3774_v4  ;;  %v2057_v30 = vsel %vm1482_vm6, %v1973_v63, %v2056_v3 }
 0x38c   : > { %v2058_v54 = vsel %vm1484_vm9, %v1977_v16, %v2057_v30 }
 0x38d   : > { %v2067_v56 = vsel %vm1474_vm3, %v2021_v22, %v2017_v8  ;;  %v2045_v8 = vrot.slane %v1917_v0, %v3774_v4 }
 0x38e   : > { %v1869_v2 = vpop.permute.xlu1 %1868  ;;  %v2068_v14 = vsel %vm1476_vm2, %v2025_v19, %v2067_v56 }
 0x38f   : > { %v1981_v45 = vrot.slane %v1869_v2, %v3774_v4  ;;  %v2069_v50 = vsel %vm1478_vm4, %v2029_v34, %v2068_v14 }
 0x390   : > { %v2070_v39 = vsel %vm1480_vm5, %v2033_v29, %v2069_v50 }
 0x391   : > { %v2059_v5 = vsel %vm1486_vm10, %v1981_v45, %v2058_v54 }
 0x392   : > { %v1911_v25 = vpop.permute.xlu1 %1910  ;;  %v2083_v26 = vsel %vm1313_vm13, %v2059_v5, 0.0  ;;  %v2079_v47 = vsel %vm3822_vm11, %v2059_v5, 0.0 }
 0x393   : > { %v2101_v11 = vsel %vm1517_vm12, %v2083_v26, 0.0  ;;  %v2089_v43 = vsel %vm1517_vm12, %v2079_v47, 0.0  ;;  %v2037_v46 = vrot.slane %v1911_v25, %v3774_v4 }
 0x394   : > { %2102 = vadd.xlane.f32.xlu1 %v2101_v11  ;;  %2090 = vadd.xlane.f32.xlu0 %v2089_v43 }
 0x395   : > { %v2071_v22 = vsel %vm1482_vm6, %v2037_v46, %v2070_v39 }
 0x396   : > { %v1914_v3 = vpop.permute.xlu1 %1913 }
 0x397   : > { %v2041_v63 = vrot.slane %v1914_v3, %v3774_v4 }
 0x399   : > { %v2072_v30 = vsel %vm1484_vm9, %v2041_v63, %v2071_v22 }
 0x39a   : > { %v2073_v16 = vsel %vm1486_vm10, %v2045_v8, %v2072_v30 }
 0x39b   : > { %v2085_v56 = vsel %vm1313_vm13, %v2073_v16, 0.0  ;;  %v2081_v2 = vsel %vm3822_vm11, %v2073_v16, 0.0 }
 0x39c   : > { %v2107_v19 = vsel %vm1517_vm12, %v2085_v56, 0.0  ;;  %v2095_v51 = vsel %vm1517_vm12, %v2081_v2, 0.0 }
 0x39d   : > { %2108 = vadd.xlane.f32.xlu1 %v2107_v19  ;;  %2096 = vadd.xlane.f32.xlu0 %v2095_v51 }
 0x405   : > { %v4363_v45 = vpop.xlane.xlu1 %2087  ;;  %v4365_v54 = vpop.xlane.xlu0 %2099 }
 0x406   : > { %v4369_v14 = vadd.f32 %v4365_v54, %v4363_v45 }
 0x408   : > { %3031 = vlog2.f32 %v4369_v14 }
 0x40b   : > { %v4372_v31 = vpop.xlane.xlu1 %2105  ;;  %v4374_v5 = vpop.xlane.xlu0 %2093 }
 0x40c   : > { %v4378_v34 = vadd.f32 %v4372_v31, %v4374_v5 }
 0x40e   : > { %3033 = vlog2.f32 %v4378_v34 }
 0x412   : > { %v3032_v25 = vpop.eup %3031 }
 0x413   : > { %v4381_v26 = vmul.f32 0.6931472, %v3032_v25 }
 0x415   : > { %v2133_v47 = vrot.slane %v4381_v26, %v4055_v32  ;;  %v2129_v11 = vrot.slane %v4381_v26, %v3184_v58  ;;  %v2137_v43 = vrot.slane %v4381_v26, %v4058_v6  ;;  %v2141_v46 = vrot.slane %v4381_v26, %v4064_v62 }
 0x417   : > { %v2287_v50 = vsub.f32 %v4080_v35, %v2133_v47  ;;  %v2286_v29 = vsub.f32 %v4077_v48, %v2129_v11  ;;  %v2288_v3 = vsub.f32 %v4085_v23, %v2137_v43  ;;  %v2289_v22 = vsub.f32 %v4094_v17, %v2141_v46 }
 0x418   : > { %v3034_v0 = vpop.eup %3033  ;;  %v2149_v48 = vrot.slane %v4381_v26, %v4099_v27  ;;  %v2145_v35 = vrot.slane %v4381_v26, %v4061_v18 }
 0x419   : > { %v4394_v39 = vmul.f32 0.6931472, %v3034_v0  ;;  %v2319_v63 = vsub.f32 0.0, %v2287_v50  ;;  %v2318_v8 = vsub.f32 0.0, %v2286_v29  ;;  %v2320_v23 = vsub.f32 0.0, %v2288_v3 }
 0x41a   : > { %v2321_v56 = vsub.f32 0.0, %v2289_v22  ;;  %v2291_v19 = vsub.f32 %v4136_v9, %v2149_v48  ;;  %v2290_v51 = vsub.f32 %v4088_v21, %v2145_v35  ;;  %v2153_v9 = vrot.slane %v4381_v26, %v4102_v60 }
 0x41b   : > { %2386 = vperm.xlu1 %2902, %v2319_v63   ;;  %2383 = vperm.xlu0 %2901, %v2318_v8   ;;  %v2197_v30 = vrot.slane %v4394_v39, %v4055_v32  ;;  %v2193_v16 = vrot.slane %v4394_v39, %v3184_v58  ;;  %v2205_v46 = vrot.slane %v4394_v39, %v4064_v62 }
 0x41c   : > { %v2323_v21 = vsub.f32 0.0, %v2291_v19  ;;  %v2322_v50 = vsub.f32 0.0, %v2290_v51  ;;  %v2217_v3 = vrot.slane %v4394_v39, %v4102_v60  ;;  %v2292_v63 = vsub.f32 %v4157_v20, %v2153_v9 }
 0x41d   : > { %v2303_v2 = vsub.f32 %v4123_v7, %v2197_v30  ;;  %v2302_v17 = vsub.f32 %v4120_v53, %v2193_v16  ;;  %v2201_v7 = vrot.slane %v4394_v39, %v4058_v6  ;;  %v2305_v29 = vsub.f32 %v4151_v15, %v2205_v46 }
 0x41e   : > { %v2209_v8 = vrot.slane %v4394_v39, %v4061_v18  ;;  %v2308_v16 = vsub.f32 %v4131_v37, %v2217_v3  ;;  %v2221_v48 = vrot.slane %v4394_v39, %v4113_v41  ;;  %v2324_v20 = vsub.f32 0.0, %v2292_v63 }
 0x41f   : > { %2389 = vperm.xlu1 %2902, %v2320_v23   ;;  %2392 = vperm.xlu0 %2901, %v2321_v56   ;;  %v2335_v11 = vsub.f32 0.0, %v2303_v2  ;;  %v2334_v43 = vsub.f32 0.0, %v2302_v17  ;;  %v2304_v0 = vsub.f32 %v4126_v61, %v2201_v7  ;;  %v2337_v22 = vsub.f32 0.0, %v2305_v29 }
 0x420   : > { %v2157_v23 = vrot.slane %v4381_v26, %v4113_v41  ;;  %v2340_v37 = vsub.f32 0.0, %v2308_v16  ;;  %v2306_v56 = vsub.f32 %v4173_v1, %v2209_v8  ;;  %v2309_v2 = vsub.f32 %v4144_v52, %v2221_v48 }
 0x421   : > { %v4409_v25 = vpop.xlane.xlu1 %2102  ;;  %v4411_v47 = vpop.xlane.xlu0 %2090  ;;  %v2336_v30 = vsub.f32 0.0, %v2304_v0  ;;  %v2213_v26 = vrot.slane %v4394_v39, %v4099_v27 }
 0x422   : > { %v4419_v53 = vadd.f32 %v4409_v25, %v4411_v47  ;;  %v2293_v51 = vsub.f32 %v4182_v49, %v2157_v23 }
 0x423   : > { %2434 = vperm.xlu1 %2902, %v2335_v11   ;;  %2431 = vperm.xlu0 %2901, %v2334_v43   ;;  %v2338_v11 = vsub.f32 0.0, %v2306_v56  ;;  %v2341_v43 = vsub.f32 0.0, %v2309_v2 }
 0x424   : > { %3035 = vlog2.f32 %v4419_v53  ;;  %v2325_v52 = vsub.f32 0.0, %v2293_v51 }
 0x427   : > { %2398 = vperm.xlu1 %2902, %v2323_v21   ;;  %2395 = vperm.xlu0 %2901, %v2322_v50   ;;  %v2307_v21 = vsub.f32 %v4195_v12, %v2213_v26  ;;  %v4703_v26 = vld [vmem:[#allocation11_spill] sm:$0xff] }
 0x429   : > { %v2339_v29 = vsub.f32 0.0, %v2307_v21  ;;  %v4705_v21 = vld [vmem:[#allocation10_spill] sm:$0xff] }
 0x42a   : > { %v4434_v15 = vpop.xlane.xlu1 %2108  ;;  %v4436_v61 = vpop.xlane.xlu0 %2096 }
 0x42b   : > { %v4440_v35 = vadd.f32 %v4434_v15, %v4436_v61  ;;  %2440 = vperm.xlu1 %2902, %v2337_v22   ;;  %2437 = vperm.xlu0 %2901, %v2336_v30  }
 0x42d   : > { %3037 = vlog2.f32 %v4440_v35 }
 0x42e   : > { %v3036_v17 = vpop.eup %3035 }
 0x42f   : > { %v4447_v19 = vmul.f32 0.6931472, %v3036_v17  ;;  %2401 = vperm.xlu1 %2902, %v2324_v20   ;;  %2449 = vperm.xlu0 %2901, %v2340_v37  }
 0x431   : > { %v2161_v46 = vrot.slane %v4447_v19, %v3184_v58  ;;  %v2165_v9 = vrot.slane %v4447_v19, %v4055_v32  ;;  %v2169_v39 = vrot.slane %v4447_v19, %v4058_v6  ;;  %v2173_v22 = vrot.slane %v4447_v19, %v4064_v62 }
 0x433   : > { %2443 = vperm.xlu1 %2902, %v2338_v11   ;;  %2452 = vperm.xlu0 %2901, %v2341_v43   ;;  %v2294_v1 = vsub.f32 %v4209_v36, %v2161_v46  ;;  %v2295_v0 = vsub.f32 %v4220_v55, %v2165_v9  ;;  %v2177_v36 = vrot.slane %v4447_v19, %v4061_v18 }
 0x434   : > { %v2296_v8 = vsub.f32 %v4232_v28, %v2169_v39  ;;  %v2297_v48 = vsub.f32 %v4242_v40, %v2173_v22  ;;  %v2181_v28 = vrot.slane %v4447_v19, %v4099_v27 }
 0x435   : > { %v2326_v7 = vsub.f32 0.0, %v2294_v1  ;;  %v2327_v63 = vsub.f32 0.0, %v2295_v0  ;;  %v2298_v55 = vsub.f32 %v4176_v13, %v2177_v36 }
 0x436   : > { %v2329_v37 = vsub.f32 0.0, %v2297_v48  ;;  %v2299_v2 = vsub.f32 %v4200_v38, %v2181_v28 }
 0x437   : > { %v3038_v49 = vpop.eup %3037  ;;  %2404 = vperm.xlu1 %2902, %v2325_v52   ;;  %2407 = vperm.xlu0 %2901, %v2326_v7   ;;  %v2330_v23 = vsub.f32 0.0, %v2298_v55  ;;  %v4704_v52 = vld [vmem:[#allocation16_spill] sm:$0xff] }
 0x438   : > { %v2121_v50 = vmul.f32 0.6931472, %v3038_v49  ;;  %v2331_v51 = vsub.f32 0.0, %v2299_v2 }
 0x43a   : > { %v2229_v3 = vrot.slane %v2121_v50, %v4055_v32  ;;  %v2233_v16 = vrot.slane %v2121_v50, %v4058_v6  ;;  %v2328_v32 = vsub.f32 0.0, %v2296_v8  ;;  %v2225_v20 = vrot.slane %v2121_v50, %v3184_v58 }
 0x43b   : > { %2446 = vperm.xlu1 %2902, %v2339_v29   ;;  %v2189_v6 = vrot.slane %v4447_v19, %v4113_v41  ;;  %v2237_v40 = vrot.slane %v2121_v50, %v4064_v62  ;;  %v2245_v17 = vrot.slane %v2121_v50, %v4099_v27  ;;  %v2249_v62 = vrot.slane %v2121_v50, %v4102_v60 }
 0x43c   : > { %v2311_v12 = vsub.f32 %v4167_v44, %v2229_v3  ;;  %v2312_v44 = vsub.f32 %v4191_v10, %v2233_v16  ;;  %v2310_v13 = vsub.f32 %v4255_v59, %v2225_v20  ;;  %v2185_v59 = vrot.slane %v4447_v19, %v4102_v60  ;;  %v4706_v60 = vld [vmem:[#allocation17_spill] sm:$0xff] }
 0x43d   : > { %v2301_v10 = vsub.f32 %v4259_v57, %v2189_v6  ;;  %v2313_v11 = vsub.f32 %v4215_v42, %v2237_v40  ;;  %v2315_v38 = vsub.f32 %v4268_v33, %v2245_v17  ;;  %v2241_v57 = vrot.slane %v2121_v50, %v4061_v18 }
 0x43e   : > { %v2343_v30 = vsub.f32 0.0, %v2311_v12  ;;  %v2344_v56 = vsub.f32 0.0, %v2312_v44  ;;  %v2342_v58 = vsub.f32 0.0, %v2310_v13  ;;  %v2300_v1 = vsub.f32 %v4703_v26, %v2185_v59 }
 0x43f   : > { %2410 = vperm.xlu1 %2902, %v2327_v63   ;;  %v2333_v43 = vsub.f32 0.0, %v2301_v10  ;;  %v2345_v46 = vsub.f32 0.0, %v2313_v11  ;;  %v2347_v27 = vsub.f32 0.0, %v2315_v38  ;;  %v2316_v42 = vsub.f32 %v4704_v52, %v2249_v62 }
 0x440   : > { %2458 = vperm.xlu0 %2901, %v2343_v30   ;;  %v2332_v7 = vsub.f32 0.0, %v2300_v1  ;;  %v2314_v19 = vsub.f32 %v4705_v21, %v2241_v57  ;;  %v2253_v9 = vrot.slane %v2121_v50, %v4113_v41 }
 0x441   : > { %v2348_v33 = vsub.f32 0.0, %v2316_v42 }
 0x442   : > { %v2346_v49 = vsub.f32 0.0, %v2314_v19  ;;  %v2317_v29 = vsub.f32 %v4706_v60, %v2253_v9 }
 0x443   : > { %2413 = vperm.xlu1 %2902, %v2328_v32  }
 0x444   : > { %2419 = vperm.xlu0 %2901, %v2330_v23   ;;  %v2349_v0 = vsub.f32 0.0, %v2317_v29 }
 0x447   : > { %2416 = vperm.xlu1 %2902, %v2329_v37  }
 0x448   : > { %2461 = vperm.xlu0 %2901, %v2344_v56  }
 0x44b   : > { %2455 = vperm.xlu1 %2902, %v2342_v58  }
 0x44c   : > { %2422 = vperm.xlu0 %2901, %v2331_v51  }
 0x44f   : > { %2428 = vperm.xlu1 %2902, %v2333_v43  }
 0x450   : > { %2464 = vperm.xlu0 %2901, %v2345_v46  }
 0x453   : > { %2470 = vperm.xlu1 %2902, %v2347_v27  }
 0x454   : > { %2425 = vperm.xlu0 %2901, %v2332_v7  }
 0x457   : > { %2473 = vperm.xlu1 %2902, %v2348_v33  }
 0x458   : > { %2467 = vperm.xlu0 %2901, %v2346_v49  }
 0x45c   : > { %2476 = vperm.xlu0 %2901, %v2349_v0  }
 0x49a   : > { %v2387_v18 = vpop.permute.xlu1 %2386  ;;  %v2384_v39 = vpop.permute.xlu0 %2383 }
 0x49b   : > { %v2485_v50 = vrot.slane %v2387_v18, %v3774_v4  ;;  %v2481_v55 = vrot.slane %v2384_v39, %v3774_v4 }
 0x49d   : > { %v2606_v48 = vsel %vm1474_vm3, %v2485_v50, %v2481_v55 }
 0x49e   : > { %v2390_v3 = vpop.permute.xlu1 %2389  ;;  %v2393_v36 = vpop.permute.xlu0 %2392 }
 0x49f   : > { %v2489_v16 = vrot.slane %v2390_v3, %v3774_v4  ;;  %v2493_v20 = vrot.slane %v2393_v36, %v3774_v4 }
 0x4a1   : > { %v2607_v44 = vsel %vm1476_vm2, %v2489_v16, %v2606_v48 }
 0x4a2   : > { %v2435_v12 = vpop.permute.xlu1 %2434  ;;  %v2432_v63 = vpop.permute.xlu0 %2431  ;;  %v2608_v13 = vsel %vm1478_vm4, %v2493_v20, %v2607_v44 }
 0x4a3   : > { %v2549_v52 = vrot.slane %v2435_v12, %v3774_v4  ;;  %v2545_v42 = vrot.slane %v2432_v63, %v3774_v4 }
 0x4a5   : > { %v2620_v9 = vsel %vm1474_vm3, %v2549_v52, %v2545_v42 }
 0x4a6   : > { %v2399_v8 = vpop.permute.xlu1 %2398  ;;  %v2396_v22 = vpop.permute.xlu0 %2395 }
 0x4a7   : > { %v2497_v28 = vrot.slane %v2396_v22, %v3774_v4  ;;  %v2501_v6 = vrot.slane %v2399_v8, %v3774_v4 }
 0x4a9   : > { %v2609_v56 = vsel %vm1480_vm5, %v2497_v28, %v2608_v13 }
 0x4aa   : > { %v2441_v30 = vpop.permute.xlu1 %2440  ;;  %v2438_v41 = vpop.permute.xlu0 %2437  ;;  %v2610_v10 = vsel %vm1482_vm6, %v2501_v6, %v2609_v56 }
 0x4ab   : > { %v2553_v21 = vrot.slane %v2438_v41, %v3774_v4  ;;  %v2557_v33 = vrot.slane %v2441_v30, %v3774_v4 }
 0x4ad   : > { %v2621_v29 = vsel %vm1476_vm2, %v2553_v21, %v2620_v9 }
 0x4ae   : > { %v2402_v32 = vpop.permute.xlu1 %2401  ;;  %v2450_v23 = vpop.permute.xlu0 %2449  ;;  %v2622_v63 = vsel %vm1478_vm4, %v2557_v33, %v2621_v29 }
 0x4af   : > { %v2505_v2 = vrot.slane %v2402_v32, %v3774_v4  ;;  %v2569_v48 = vrot.slane %v2450_v23, %v3774_v4 }
 0x4b1   : > { %v2611_v51 = vsel %vm1484_vm9, %v2505_v2, %v2610_v10 }
 0x4b2   : > { %v2444_v37 = vpop.permute.xlu1 %2443  ;;  %v2453_v40 = vpop.permute.xlu0 %2452 }
 0x4b3   : > { %v2561_v0 = vrot.slane %v2444_v37, %v3774_v4  ;;  %v2573_v13 = vrot.slane %v2453_v40, %v3774_v4 }
 0x4b5   : > { %v2623_v30 = vsel %vm1480_vm5, %v2561_v0, %v2622_v63 }
 0x4b6   : > { %v2405_v58 = vpop.permute.xlu1 %2404  ;;  %v2408_v38 = vpop.permute.xlu0 %2407 }
 0x4b7   : > { %v2509_v17 = vrot.slane %v2405_v58, %v3774_v4  ;;  %v2513_v39 = vrot.slane %v2408_v38, %v3774_v4 }
 0x4b9   : > { %v2612_v11 = vsel %vm1486_vm10, %v2509_v17, %v2611_v51 }
 0x4ba   : > { %v2447_v59 = vpop.permute.xlu1 %2446  ;;  %v2638_v43 = vsel %vm3822_vm11, %v2612_v11, 0.0 }
 0x4bb   : > { %v2642_v62 = vsel %vm1517_vm12, %v2638_v43, 0.0  ;;  %v2565_v3 = vrot.slane %v2447_v59, %v3774_v4 }
 0x4bc   : > { %2643 = vadd.xlane.f32.xlu1 %v2642_v62 }
 0x4bd   : > { %v2624_v50 = vsel %vm1482_vm6, %v2565_v3, %v2623_v30  ;;  %v2666_v30 = vmul.f32 0.33333334, %v4374_v5  ;;  %v2677_v5 = vmul.f32 0.25, %v4434_v15 }
 0x4be   : > { %v2411_v46 = vpop.permute.xlu1 %2410  ;;  %v2625_v2 = vsel %vm1484_vm9, %v2569_v48, %v2624_v50  ;;  %v2674_v50 = vmul.f32 0.25, %v4365_v54 }
 0x4bf   : > { %v2459_v26 = vpop.permute.xlu0 %2458  ;;  %v2517_v49 = vrot.slane %v2411_v46, %v3774_v4  ;;  %v2626_v38 = vsel %vm1486_vm10, %v2573_v13, %v2625_v2 }
 0x4c0   : > { %v2581_v28 = vrot.slane %v2459_v26, %v3774_v4 }
 0x4c1   : > { %v2613_v8 = vsel %vm1474_vm3, %v2517_v49, %v2513_v39 }
 0x4c2   : > { %v2414_v1 = vpop.permute.xlu1 %2413 }
 0x4c3   : > { %v2420_v57 = vpop.permute.xlu0 %2419  ;;  %v2521_v18 = vrot.slane %v2414_v1, %v3774_v4 }
 0x4c4   : > { %v2529_v20 = vrot.slane %v2420_v57, %v3774_v4 }
 0x4c5   : > { %v2614_v41 = vsel %vm1476_vm2, %v2521_v18, %v2613_v8  ;;  %v2664_v8 = vmul.f32 0.33333334, %v4363_v45  ;;  %v2675_v45 = vmul.f32 0.25, %v4409_v25 }
 0x4c6   : > { %v2417_v27 = vpop.permute.xlu1 %2416 }
 0x4c7   : > { %v2462_v7 = vpop.permute.xlu0 %2461  ;;  %v2525_v36 = vrot.slane %v2417_v27, %v3774_v4 }
 0x4c8   : > { %v2585_v51 = vrot.slane %v2462_v7, %v3774_v4  ;;  %v2640_v7 = vsel %vm3822_vm11, %v2626_v38, 0.0 }
 0x4c9   : > { %v2615_v55 = vsel %vm1478_vm4, %v2525_v36, %v2614_v41  ;;  %v2648_v49 = vsel %vm1517_vm12, %v2640_v7, 0.0  ;;  %v2667_v41 = vmul.f32 0.33333334, %v4436_v61 }
 0x4ca   : > { %v2456_v19 = vpop.permute.xlu1 %2455  ;;  %v2616_v6 = vsel %vm1480_vm5, %v2529_v20, %v2615_v55 }
 0x4cb   : > { %v2423_v60 = vpop.permute.xlu0 %2422  ;;  %v2577_v16 = vrot.slane %v2456_v19, %v3774_v4 }
 0x4cc   : > { %v2533_v32 = vrot.slane %v2423_v60, %v3774_v4 }
 0x4cd   : > { %v2627_v58 = vsel %vm1474_vm3, %v2581_v28, %v2577_v16 }
 0x4ce   : > { %v2429_v12 = vpop.permute.xlu1 %2428  ;;  %v2617_v10 = vsel %vm1482_vm6, %v2533_v32, %v2616_v6  ;;  %v2628_v62 = vsel %vm1476_vm2, %v2585_v51, %v2627_v58 }
 0x4cf   : > { %v2465_v22 = vpop.permute.xlu0 %2464  ;;  %v2541_v23 = vrot.slane %v2429_v12, %v3774_v4 }
 0x4d0   : > { %v2589_v17 = vrot.slane %v2465_v22, %v3774_v4  ;;  %v2665_v22 = vmul.f32 0.33333334, %v4411_v47  ;;  %v2676_v47 = vmul.f32 0.25, %v4372_v31 }
 0x4d2   : > { %v2471_v44 = vpop.permute.xlu1 %2470  ;;  %v2629_v1 = vsel %vm1478_vm4, %v2589_v17, %v2628_v62 }
 0x4d3   : > { %v2426_v37 = vpop.permute.xlu0 %2425  ;;  %v2597_v57 = vrot.slane %v2471_v44, %v3774_v4 }
 0x4d4   : > { %v2537_v56 = vrot.slane %v2426_v37, %v3774_v4 }
 0x4d6   : > { %v2618_v11 = vsel %vm1484_vm9, %v2537_v56, %v2617_v10  ;;  %v2474_v59 = vpop.permute.xlu1 %2473 }
 0x4d7   : > { %v2468_v40 = vpop.permute.xlu0 %2467  ;;  %v2619_v43 = vsel %vm1486_vm10, %v2541_v23, %v2618_v11  ;;  %v2601_v52 = vrot.slane %v2474_v59, %v3774_v4 }
 0x4d8   : > { %v2593_v46 = vrot.slane %v2468_v40, %v3774_v4  ;;  %v2639_v26 = vsel %vm3822_vm11, %v2619_v43, 0.0 }
 0x4d9   : > { %v2645_v27 = vsel %vm1517_vm12, %v2639_v26, 0.0 }
 0x4da   : > { %v2630_v42 = vsel %vm1480_vm5, %v2593_v46, %v2629_v1  ;;  %2646 = vadd.xlane.f32.xlu0 %v2645_v27 }
 0x4db   : > { %v2631_v21 = vsel %vm1482_vm6, %v2597_v57, %v2630_v42  ;;  %v2477_v19 = vpop.permute.xlu0 %2476 }
 0x4dc   : > { %v2605_v9 = vrot.slane %v2477_v19, %v3774_v4  ;;  %v2632_v33 = vsel %vm1484_vm9, %v2601_v52, %v2631_v21 }
 0x4de   : > { %2649 = vadd.xlane.f32.xlu0 %v2648_v49  ;;  %v2633_v60 = vsel %vm1486_vm10, %v2605_v9, %v2632_v33 }
 0x4df   : > { %v2641_v29 = vsel %vm3822_vm11, %v2633_v60, 0.0 }
 0x4e0   : > { %v2651_v0 = vsel %vm1517_vm12, %v2641_v29, 0.0 }
 0x4e1   : > { %2652 = vadd.xlane.f32.xlu1 %v2651_v0 }
 0x549   : > { %v2644_v4 = vpop.xlane.xlu1 %2643 }
 0x54a   : > { %v2655_v24 = vmul.f32 0.33333334, %v2644_v4 }
 0x54c   : > { %2660 = vst.msk [vmem:[%s4570_s6] sm:$0xff] %vm2659_vm14, %v2655_v24 }
 0x54d   : > { %2669 = vst.msk [vmem:[%s4570_s6] sm:$0xff] %vm2668_vm15, %v2664_v8 }
 0x54e   : > { %2679 = vst.msk [vmem:[%s4570_s6] sm:$0xff] %vm2678_vm0, %v2674_v50 }
 0x54f   : > { %2684 = vst.msk [vmem:[%s4570_s6] sm:$0xff] %vm2683_vm1, %v4369_v14 }
 0x567   : > { %v2647_v18 = vpop.xlane.xlu0 %2646 }
 0x568   : > { %v2656_v39 = vmul.f32 0.33333334, %v2647_v18 }
 0x56a   : > { %2661 = vst.msk [vmem:[%s4570_s6 + $0x8] sm:$0xff] %vm2659_vm14, %v2656_v39 }
 0x56b   : > { %v2650_v3 = vpop.xlane.xlu0 %2649  ;;  %2670 = vst.msk [vmem:[%s4570_s6 + $0x8] sm:$0xff] %vm2668_vm15, %v2665_v22 }
 0x56c   : > { %v2657_v36 = vmul.f32 0.33333334, %v2650_v3  ;;  %2680 = vst.msk [vmem:[%s4570_s6 + $0x8] sm:$0xff] %vm2678_vm0, %v2675_v45 }
 0x56d   : > { %2685 = vst.msk [vmem:[%s4570_s6 + $0x8] sm:$0xff] %vm2683_vm1, %v4419_v53 }
 0x56e   : > { %2662 = vst.msk [vmem:[%s4570_s6 + $0x10] sm:$0xff] %vm2659_vm14, %v2657_v36  ;;  %v2653_v12 = vpop.xlane.xlu1 %2652 }
 0x56f   : > { %v2658_v63 = vmul.f32 0.33333334, %v2653_v12  ;;  %2671 = vst.msk [vmem:[%s4570_s6 + $0x10] sm:$0xff] %vm2668_vm15, %v2666_v30 }
 0x570   : > { %2681 = vst.msk [vmem:[%s4570_s6 + $0x10] sm:$0xff] %vm2678_vm0, %v2676_v47 }
 0x571   : > { %2663 = vst.msk [vmem:[%s4570_s6 + $0x18] sm:$0xff] %vm2659_vm14, %v2658_v63 }
 0x572   : > { %2672 = vst.msk [vmem:[%s4570_s6 + $0x18] sm:$0xff] %vm2668_vm15, %v2667_v41 }
 0x573   : > { %2682 = vst.msk [vmem:[%s4570_s6 + $0x18] sm:$0xff] %vm2678_vm0, %v2677_v5 }
 0x574   : > { %2686 = vst.msk [vmem:[%s4570_s6 + $0x10] sm:$0xff] %vm2683_vm1, %v4378_v34  ;;  %2687 = vst.msk [vmem:[%s4570_s6 + $0x18] sm:$0xff] %vm2683_vm1, %v4440_v35 }
 0x575 PF: > { %s13_s12 = sadd.s32 1, %s3045_s12  }
 0x576   : > { %p10_p5 = scmp.ge.s32.totalorder %s13_s12, 4  }
 0x578   :  { %12 = sbr.rel (!%p10_p5) target bundleno = 1 (0x1), region = 62 }

</bundles_post_ra>
